<compile_context>
chip_gen: v7x
topology: tpu7x:2x2x1
jax: 0.10.0
libtpu: 0.0.40
codegen_flags: <defaults>
</compile_context>

<pallas_src>
import jax
import jax.numpy as jnp
from jax.experimental import pallas as pl
from jax.experimental.pallas import tpu as pltpu


def _round_up(v, m):
    return ((v + m - 1) // m) * m


def _pad2(a, rows, cols):
    r, c = a.shape
    return jnp.pad(a, ((0, rows - r), (0, cols - c)))


# ----------------------------------------------------------------------------
# Kernel
# ----------------------------------------------------------------------------
def vae_kernel(x_ref, ew1_ref, eb1_ref, ew2_ref, eb2_ref,
               dw1_ref, db1_ref, dw2_ref, db2_ref, eps_ref,
               rec_ref, mu_ref, logvar_ref):
    cp = mu_ref.shape[-1]                 # lane-aligned latent width (multiple of 128)

    x = x_ref[...]                        # bf16 batch tile

    # ----- Encoder hidden (bf16 operands, f32 accumulation) -----
    h = jnp.dot(x, ew1_ref[...], preferred_element_type=jnp.float32) + eb1_ref[...]
    # nn.Dropout(0.0)(ones) * h == h  (no-op)
    h = jnp.where(h > 0, h, 0.01 * h)     # F.leaky_relu, slope 0.01 (f32)

    # ----- Encoder output: fused [mu | log_var] head, split at aligned Cp -----
    enc = (jnp.dot(h.astype(jnp.bfloat16), ew2_ref[...],
                   preferred_element_type=jnp.float32) + eb2_ref[...])
    mu = enc[:, :cp]
    log_var = enc[:, cp:]

    # ----- Reparameterization (f32). Padded rows only see bias-driven
    #       exp(0.5*log_var): finite, and cropped off in the wrapper. -----
    code = mu + eps_ref[...] * jnp.exp(0.5 * log_var)

    # ----- Decoder -----
    d = (jnp.dot(code.astype(jnp.bfloat16), dw1_ref[...],
                 preferred_element_type=jnp.float32) + db1_ref[...])
    d = jnp.where(d > 0, d, 0.01 * d)     # F.leaky_relu
    rec = (jnp.dot(d.astype(jnp.bfloat16), dw2_ref[...],
                   preferred_element_type=jnp.float32) + db2_ref[...])

    rec_ref[...] = rec.astype(rec_ref.dtype)
    mu_ref[...] = mu.astype(mu_ref.dtype)
    logvar_ref[...] = log_var.astype(logvar_ref.dtype)


# ----------------------------------------------------------------------------
# One-time parameter preparation (pad to 128-lane multiples, fuse heads, bf16)
# ----------------------------------------------------------------------------
def prepare_params(params, weight_dtype=jnp.bfloat16):
    orig_dim, inter_dim = params["enc_w1"].shape
    code_dim = params["dec_w1"].shape[0]
    Dp = _round_up(orig_dim, 128)
    Hp = _round_up(inter_dim, 128)
    Cp = _round_up(code_dim, 128)

    # fused encoder head: each half padded to Cp, then concatenated -> (Hp, 2*Cp)
    ewmu = _pad2(params["enc_w2"][:, :code_dim], Hp, Cp)
    ewlv = _pad2(params["enc_w2"][:, code_dim:], Hp, Cp)
    ew2 = jnp.concatenate([ewmu, ewlv], axis=1)
    eb2 = jnp.concatenate([_pad2(params["enc_b2"][:, :code_dim], 1, Cp),
                           _pad2(params["enc_b2"][:, code_dim:], 1, Cp)], axis=1)

    return dict(
        ew1=_pad2(params["enc_w1"], Dp, Hp).astype(weight_dtype),
        eb1=_pad2(params["enc_b1"], 1, Hp).astype(jnp.float32),
        ew2=ew2.astype(weight_dtype),
        eb2=eb2.astype(jnp.float32),
        dw1=_pad2(params["dec_w1"], Cp, Hp).astype(weight_dtype),
        db1=_pad2(params["dec_b1"], 1, Hp).astype(jnp.float32),
        dw2=_pad2(params["dec_w2"], Hp, Dp).astype(weight_dtype),
        db2=_pad2(params["dec_b2"], 1, Dp).astype(jnp.float32),
        dims=(orig_dim, inter_dim, code_dim, Dp, Hp, Cp),
    )


# ----------------------------------------------------------------------------
# Wrapper
# ----------------------------------------------------------------------------
def _build_call(tb, Bp, Dp, Hp, Cp, vmem_limit, single_buffer_weights):
    def const(shape):
        if single_buffer_weights:
            # resident weights: DMA'd once (constant index_map), no need to
            # double-buffer -> halves their VMEM footprint.
            return pl.BlockSpec(shape, lambda i: (0, 0),
                                pipeline_mode=pl.Buffered(1))
        return pl.BlockSpec(shape, lambda i: (0, 0))

    def batch(feat):
        return pl.BlockSpec((tb, feat), lambda i: (i, 0))

    return pl.pallas_call(
        vae_kernel,
        grid=(Bp // tb,),
        in_specs=[
            batch(Dp),                                   # x tile (bf16)
            const((Dp, Hp)), const((1, Hp)),             # encoder hidden
            const((Hp, 2 * Cp)), const((1, 2 * Cp)),     # fused mu|log_var head
            const((Cp, Hp)), const((1, Hp)),             # decoder hidden
            const((Hp, Dp)), const((1, Dp)),             # decoder output
            batch(Cp),                                   # eps tile (f32)
        ],
        out_specs=(batch(Dp), batch(Cp), batch(Cp)),
        out_shape=(
            jax.ShapeDtypeStruct((Bp, Dp), jnp.float32),
            jax.ShapeDtypeStruct((Bp, Cp), jnp.float32),
            jax.ShapeDtypeStruct((Bp, Cp), jnp.float32),
        ),
        compiler_params=pltpu.CompilerParams(
            dimension_semantics=("parallel",),
            vmem_limit_bytes=vmem_limit),
    )


def vae_forward(x, prep, eps, *, batch_tile=512):
    """x: (B, orig_dim) f32, prep: prepare_params(...), eps: (B, code_dim) f32.

    Returns (reconstructed (B, orig_dim), mu (B, code_dim), log_var (B, code_dim)).
    """
    orig_dim, inter_dim, code_dim, Dp, Hp, Cp = prep["dims"]
    B = x.shape[0]

    # Batch tile: multiple of 8 (sublane), and >= 2 grid steps when B allows it
    # so the "parallel" axis can be sharded across v7x's two TensorCores.
    tb = _round_up(min(batch_tile, B), 8)
    if B > 8:
        tb = min(tb, _round_up((B + 1) // 2, 8))

    # Explicit VMEM budget check (v7x has 64 MiB physical / 32 MiB scoped default).
    def vmem_bytes(t):
        wbytes = (Dp * Hp + Hp * 2 * Cp + Cp * Hp + Hp * Dp) * 2      # bf16, 1x buffered
        bbytes = (2 * Hp + 2 * Cp + 2 * Dp) * 4                        # f32 biases
        stream = 2 * (t * Dp * 2 + t * Cp * 4)                         # x(bf16)+eps(f32), 2x buf
        outs = 2 * (t * Dp * 4 + 2 * t * Cp * 4)                       # f32 outputs, 2x buf
        interm = 2 * t * Hp * 4 + 3 * t * Cp * 4 + t * Dp * 4          # h/d/enc/code temps
        return wbytes + bbytes + stream + outs + interm

    VMEM_BUDGET = 48 << 20
    while tb > 8 and vmem_bytes(tb) > VMEM_BUDGET:
        tb = max(8, _round_up(tb // 2, 8))
    # TODO(synk): if vmem_bytes(8) still exceeds the budget (very large
    # orig/inter dims on v7x), add a K-tiled "arbitrary" grid axis over Hp
    # instead of keeping full weights resident.
    vmem_limit = int(min(max(vmem_bytes(tb) * 3 // 2, 32 << 20), 64 << 20))

    Bp = _round_up(B, tb)

    # Pad/cast activations only when needed (skip no-op HBM passes).
    xp = x.astype(jnp.bfloat16)
    if (Bp, Dp) != (B, orig_dim):
        xp = jnp.pad(xp, ((0, Bp - B), (0, Dp - orig_dim)))
    epsp = eps.astype(jnp.float32)
    if (Bp, Cp) != (B, code_dim):
        epsp = jnp.pad(epsp, ((0, Bp - B), (0, Cp - code_dim)))

    args = (xp, prep["ew1"], prep["eb1"], prep["ew2"], prep["eb2"],
            prep["dw1"], prep["db1"], prep["dw2"], prep["db2"], epsp)

    try:
        outs = _build_call(tb, Bp, Dp, Hp, Cp, vmem_limit, True)(*args)
        outs = jax.block_until_ready(outs)
    except Exception:
        # pl.Buffered(1) / pipeline_mode unsupported on this jax/backend:
        # fall back to default double-buffered resident weights.
        outs = _build_call(tb, Bp, Dp, Hp, Cp, vmem_limit, False)(*args)
    rec_p, mu_p, lv_p = outs

    # Crop padding back off (skipped when already exact).
    rec = rec_p if (Bp == B and Dp == orig_dim) else rec_p[:B, :orig_dim]
    mu = mu_p if (Bp == B and Cp == code_dim) else mu_p[:B, :code_dim]
    lv = lv_p if (Bp == B and Cp == code_dim) else lv_p[:B, :code_dim]
    return rec, mu, lv


# ----------------------------------------------------------------------------
# Synthetic init + pure-JAX reference (mirrors the PyTorch forward, f32)
# ----------------------------------------------------------------------------
def init_params(key, orig_dim, inter_dim, code_dim):
    """Deterministic synthetic init. Weights stored as (in, out) = PyTorch W.T."""
    ks = jax.random.split(key, 8)

    def lin(kw, kb, fan_in, fan_out):
        bound = 1.0 / jnp.sqrt(fan_in)
        w = jax.random.uniform(kw, (fan_in, fan_out), jnp.float32, -bound, bound)
        b = jax.random.uniform(kb, (1, fan_out), jnp.float32, -bound, bound)
        return w, b

    enc_w1, enc_b1 = lin(ks[0], ks[1], orig_dim, inter_dim)        # encoder_hidden_layer
    enc_w2, enc_b2 = lin(ks[2], ks[3], inter_dim, 2 * code_dim)    # encoder_output_layer
    dec_w1, dec_b1 = lin(ks[4], ks[5], code_dim, inter_dim)        # decoder_hidden_layer
    dec_w2, dec_b2 = lin(ks[6], ks[7], inter_dim, orig_dim)        # decoder_output_layer
    return dict(enc_w1=enc_w1, enc_b1=enc_b1, enc_w2=enc_w2, enc_b2=enc_b2,
                dec_w1=dec_w1, dec_b1=dec_b1, dec_w2=dec_w2, dec_b2=dec_b2)


def reference_forward(x, params, eps):
    def lrelu(v):
        return jnp.where(v > 0, v, 0.01 * v)

    h = lrelu(x @ params["enc_w1"] + params["enc_b1"])
    enc = h @ params["enc_w2"] + params["enc_b2"]
    code_dim = params["dec_w1"].shape[0]
    mu = enc[:, :code_dim]
    log_var = enc[:, code_dim:]
    code = mu + eps * jnp.exp(0.5 * log_var)
    d = lrelu(code @ params["dec_w1"] + params["dec_b1"])
    rec = d @ params["dec_w2"] + params["dec_b2"]
    return rec, mu, log_var


if __name__ == "__main__":
    # small shapes; batch_tile=8 -> grid of 2 pipelined steps
    B, orig_dim, inter_dim, code_dim = 16, 16, 32, 4

    key = jax.random.PRNGKey(0)
    k_x, k_eps, k_p = jax.random.split(key, 3)

    x = jax.random.normal(k_x, (B, orig_dim), jnp.float32)
    # TODO(synk): eps could be generated in-kernel (pltpu.prng_seed keyed on
    # seed + pl.program_id + pltpu.prng_random_bits) to drop one streamed input;
    # kept as a host input here for deterministic comparison with the reference.
    eps = jax.random.normal(k_eps, (B, code_dim), jnp.float32)
    params = init_params(k_p, orig_dim, inter_dim, code_dim)

    prep = prepare_params(params)   # pad + fuse heads + bf16-cast ONCE, reuse per forward
    rec, mu, log_var = vae_forward(x, prep, eps, batch_tile=8)
    jax.block_until_ready((rec, mu, log_var))

    rec_ref, mu_ref, lv_ref = reference_forward(x, params, eps)
    assert rec.shape == (B, orig_dim) and mu.shape == (B, code_dim) and log_var.shape == (B, code_dim)
    # bf16 matmul operands (f32 accumulation) -> loosened tolerances vs f32 reference
    assert jnp.allclose(rec, rec_ref, atol=5e-2, rtol=5e-2)
    assert jnp.allclose(mu, mu_ref, atol=5e-2, rtol=5e-2)
    assert jnp.allclose(log_var, lv_ref, atol=5e-2, rtol=5e-2)

    print("KERNEL_OK")
</pallas_src>

<mosaic_0001>
module attributes {stable_mosaic.version = 11 : i64} {
  func.func @vae_kernel(%arg0: i32, %arg1: memref<8x128xbf16, #tpu.memory_space<vmem>>, %arg2: memref<128x128xbf16, #tpu.memory_space<vmem>>, %arg3: memref<1x128xf32, #tpu.memory_space<vmem>>, %arg4: memref<128x256xbf16, #tpu.memory_space<vmem>>, %arg5: memref<1x256xf32, #tpu.memory_space<vmem>>, %arg6: memref<128x128xbf16, #tpu.memory_space<vmem>>, %arg7: memref<1x128xf32, #tpu.memory_space<vmem>>, %arg8: memref<128x128xbf16, #tpu.memory_space<vmem>>, %arg9: memref<1x128xf32, #tpu.memory_space<vmem>>, %arg10: memref<8x128xf32, #tpu.memory_space<vmem>>, %arg11: memref<8x128xf32, #tpu.memory_space<vmem>>, %arg12: memref<8x128xf32, #tpu.memory_space<vmem>>, %arg13: memref<8x128xf32, #tpu.memory_space<vmem>>) attributes {dimension_semantics = [#tpu.dimension_semantics<parallel>], iteration_bounds = array<i64: 2>, scalar_prefetch = 0 : i64, scratch_operands = 0 : i64, tpu.core_type = #tpu.core_type<tc>, window_params = [{transform_indices = @transform_0, window_bounds = array<i64: 8, 128>}, {pipeline_mode = #tpu.pipeline_mode<synchronous>, transform_indices = @transform_1, window_bounds = array<i64: 128, 128>}, {pipeline_mode = #tpu.pipeline_mode<synchronous>, transform_indices = @transform_2, window_bounds = array<i64: 1, 128>}, {pipeline_mode = #tpu.pipeline_mode<synchronous>, transform_indices = @transform_3, window_bounds = array<i64: 128, 256>}, {pipeline_mode = #tpu.pipeline_mode<synchronous>, transform_indices = @transform_4, window_bounds = array<i64: 1, 256>}, {pipeline_mode = #tpu.pipeline_mode<synchronous>, transform_indices = @transform_5, window_bounds = array<i64: 128, 128>}, {pipeline_mode = #tpu.pipeline_mode<synchronous>, transform_indices = @transform_6, window_bounds = array<i64: 1, 128>}, {pipeline_mode = #tpu.pipeline_mode<synchronous>, transform_indices = @transform_7, window_bounds = array<i64: 128, 128>}, {pipeline_mode = #tpu.pipeline_mode<synchronous>, transform_indices = @transform_8, window_bounds = array<i64: 1, 128>}, {transform_indices = @transform_9, window_bounds = array<i64: 8, 128>}, {transform_indices = @transform_10, window_bounds = array<i64: 8, 128>}, {transform_indices = @transform_11, window_bounds = array<i64: 8, 128>}, {transform_indices = @transform_12, window_bounds = array<i64: 8, 128>}]} {
    %c0 = arith.constant 0 : index
    %c0_0 = arith.constant 0 : index
    %0 = vector.load %arg1[%c0, %c0_0] : memref<8x128xbf16, #tpu.memory_space<vmem>>, vector<8x128xbf16>
    %c0_1 = arith.constant 0 : index
    %c0_2 = arith.constant 0 : index
    %1 = vector.load %arg2[%c0_1, %c0_2] : memref<128x128xbf16, #tpu.memory_space<vmem>>, vector<128x128xbf16>
    %cst = arith.constant dense<0.000000e+00> : vector<8x128xf32>
    %2 = tpu.matmul %0, %1, %cst {dimension_numbers = #tpu.dot_dimension_numbers<[1], [0], [0], [1], [0, 0, 1, 1], [], []>} : vector<8x128xbf16>, vector<128x128xbf16>, vector<8x128xf32> -> vector<8x128xf32>
    %c0_3 = arith.constant 0 : index
    %c0_4 = arith.constant 0 : index
    %3 = vector.load %arg3[%c0_3, %c0_4] : memref<1x128xf32, #tpu.memory_space<vmem>>, vector<1x128xf32>
    %4 = vector.broadcast %3 : vector<1x128xf32> to vector<8x128xf32>
    %5 = arith.addf %2, %4 : vector<8x128xf32>
    %cst_5 = arith.constant 0.000000e+00 : f32
    %6 = vector.broadcast %cst_5 : f32 to vector<8x128xf32>
    %7 = arith.cmpf ogt, %5, %6 : vector<8x128xf32>
    %cst_6 = arith.constant 0.00999999977 : f32
    %8 = vector.broadcast %cst_6 : f32 to vector<8x128xf32>
    %9 = arith.mulf %8, %5 : vector<8x128xf32>
    %10 = arith.select %7, %5, %9 : vector<8x128xi1>, vector<8x128xf32>
    %11 = arith.truncf %10 : vector<8x128xf32> to vector<8x128xbf16>
    %c0_7 = arith.constant 0 : index
    %c0_8 = arith.constant 0 : index
    %12 = vector.load %arg4[%c0_7, %c0_8] : memref<128x256xbf16, #tpu.memory_space<vmem>>, vector<128x256xbf16>
    %cst_9 = arith.constant dense<0.000000e+00> : vector<8x256xf32>
    %13 = tpu.matmul %11, %12, %cst_9 {dimension_numbers = #tpu.dot_dimension_numbers<[1], [0], [0], [1], [0, 0, 1, 1], [], []>} : vector<8x128xbf16>, vector<128x256xbf16>, vector<8x256xf32> -> vector<8x256xf32>
    %c0_10 = arith.constant 0 : index
    %c0_11 = arith.constant 0 : index
    %14 = vector.load %arg5[%c0_10, %c0_11] : memref<1x256xf32, #tpu.memory_space<vmem>>, vector<1x256xf32>
    %15 = vector.broadcast %14 : vector<1x256xf32> to vector<8x256xf32>
    %16 = arith.addf %13, %15 : vector<8x256xf32>
    %17 = vector.extract_strided_slice %16 {offsets = [0, 0], sizes = [8, 128], strides = [1, 1]} : vector<8x256xf32> to vector<8x128xf32>
    %18 = vector.extract_strided_slice %16 {offsets = [0, 128], sizes = [8, 128], strides = [1, 1]} : vector<8x256xf32> to vector<8x128xf32>
    %c0_12 = arith.constant 0 : index
    %c0_13 = arith.constant 0 : index
    %19 = vector.load %arg10[%c0_12, %c0_13] : memref<8x128xf32, #tpu.memory_space<vmem>>, vector<8x128xf32>
    %cst_14 = arith.constant 5.000000e-01 : f32
    %20 = vector.broadcast %cst_14 : f32 to vector<8x128xf32>
    %21 = arith.mulf %20, %18 : vector<8x128xf32>
    %22 = math.exp %21 : vector<8x128xf32>
    %23 = arith.mulf %19, %22 : vector<8x128xf32>
    %24 = arith.addf %17, %23 : vector<8x128xf32>
    %25 = arith.truncf %24 : vector<8x128xf32> to vector<8x128xbf16>
    %c0_15 = arith.constant 0 : index
    %c0_16 = arith.constant 0 : index
    %26 = vector.load %arg6[%c0_15, %c0_16] : memref<128x128xbf16, #tpu.memory_space<vmem>>, vector<128x128xbf16>
    %cst_17 = arith.constant dense<0.000000e+00> : vector<8x128xf32>
    %27 = tpu.matmul %25, %26, %cst_17 {dimension_numbers = #tpu.dot_dimension_numbers<[1], [0], [0], [1], [0, 0, 1, 1], [], []>} : vector<8x128xbf16>, vector<128x128xbf16>, vector<8x128xf32> -> vector<8x128xf32>
    %c0_18 = arith.constant 0 : index
    %c0_19 = arith.constant 0 : index
    %28 = vector.load %arg7[%c0_18, %c0_19] : memref<1x128xf32, #tpu.memory_space<vmem>>, vector<1x128xf32>
    %29 = vector.broadcast %28 : vector<1x128xf32> to vector<8x128xf32>
    %30 = arith.addf %27, %29 : vector<8x128xf32>
    %cst_20 = arith.constant 0.000000e+00 : f32
    %31 = vector.broadcast %cst_20 : f32 to vector<8x128xf32>
    %32 = arith.cmpf ogt, %30, %31 : vector<8x128xf32>
    %cst_21 = arith.constant 0.00999999977 : f32
    %33 = vector.broadcast %cst_21 : f32 to vector<8x128xf32>
    %34 = arith.mulf %33, %30 : vector<8x128xf32>
    %35 = arith.select %32, %30, %34 : vector<8x128xi1>, vector<8x128xf32>
    %36 = arith.truncf %35 : vector<8x128xf32> to vector<8x128xbf16>
    %c0_22 = arith.constant 0 : index
    %c0_23 = arith.constant 0 : index
    %37 = vector.load %arg8[%c0_22, %c0_23] : memref<128x128xbf16, #tpu.memory_space<vmem>>, vector<128x128xbf16>
    %cst_24 = arith.constant dense<0.000000e+00> : vector<8x128xf32>
    %38 = tpu.matmul %36, %37, %cst_24 {dimension_numbers = #tpu.dot_dimension_numbers<[1], [0], [0], [1], [0, 0, 1, 1], [], []>} : vector<8x128xbf16>, vector<128x128xbf16>, vector<8x128xf32> -> vector<8x128xf32>
    %c0_25 = arith.constant 0 : index
    %c0_26 = arith.constant 0 : index
    %39 = vector.load %arg9[%c0_25, %c0_26] : memref<1x128xf32, #tpu.memory_space<vmem>>, vector<1x128xf32>
    %40 = vector.broadcast %39 : vector<1x128xf32> to vector<8x128xf32>
    %41 = arith.addf %38, %40 : vector<8x128xf32>
    %c0_27 = arith.constant 0 : index
    %c0_28 = arith.constant 0 : index
    %42 = vector.load %arg11[%c0_27, %c0_28] : memref<8x128xf32, #tpu.memory_space<vmem>>, vector<8x128xf32>
    tpu.vector_store %arg11[%c0_27, %c0_28], %41 {strides = array<i32>} : memref<8x128xf32, #tpu.memory_space<vmem>>, vector<8x128xf32>,
    %c0_29 = arith.constant 0 : index
    %c0_30 = arith.constant 0 : index
    %43 = vector.load %arg12[%c0_29, %c0_30] : memref<8x128xf32, #tpu.memory_space<vmem>>, vector<8x128xf32>
    tpu.vector_store %arg12[%c0_29, %c0_30], %17 {strides = array<i32>} : memref<8x128xf32, #tpu.memory_space<vmem>>, vector<8x128xf32>,
    %c0_31 = arith.constant 0 : index
    %c0_32 = arith.constant 0 : index
    %44 = vector.load %arg13[%c0_31, %c0_32] : memref<8x128xf32, #tpu.memory_space<vmem>>, vector<8x128xf32>
    tpu.vector_store %arg13[%c0_31, %c0_32], %18 {strides = array<i32>} : memref<8x128xf32, #tpu.memory_space<vmem>>, vector<8x128xf32>,
    return
  }
  func.func @transform_0(%arg0: i32) -> (i32, i32) {
    %c0_i32 = arith.constant 0 : i32
    %c0_i32_0 = arith.constant 0 : i32
    return %arg0, %c0_i32 : i32, i32
  }
  func.func @transform_1(%arg0: i32) -> (i32, i32) {
    %c0_i32 = arith.constant 0 : i32
    %c0_i32_0 = arith.constant 0 : i32
    %c0_i32_1 = arith.constant 0 : i32
    return %c0_i32, %c0_i32_0 : i32, i32
  }
  func.func @transform_2(%arg0: i32) -> (i32, i32) {
    %c0_i32 = arith.constant 0 : i32
    %c0_i32_0 = arith.constant 0 : i32
    %c0_i32_1 = arith.constant 0 : i32
    return %c0_i32, %c0_i32_0 : i32, i32
  }
  func.func @transform_3(%arg0: i32) -> (i32, i32) {
    %c0_i32 = arith.constant 0 : i32
    %c0_i32_0 = arith.constant 0 : i32
    %c0_i32_1 = arith.constant 0 : i32
    return %c0_i32, %c0_i32_0 : i32, i32
  }
  func.func @transform_4(%arg0: i32) -> (i32, i32) {
    %c0_i32 = arith.constant 0 : i32
    %c0_i32_0 = arith.constant 0 : i32
    %c0_i32_1 = arith.constant 0 : i32
    return %c0_i32, %c0_i32_0 : i32, i32
  }
  func.func @transform_5(%arg0: i32) -> (i32, i32) {
    %c0_i32 = arith.constant 0 : i32
    %c0_i32_0 = arith.constant 0 : i32
    %c0_i32_1 = arith.constant 0 : i32
    return %c0_i32, %c0_i32_0 : i32, i32
  }
  func.func @transform_6(%arg0: i32) -> (i32, i32) {
    %c0_i32 = arith.constant 0 : i32
    %c0_i32_0 = arith.constant 0 : i32
    %c0_i32_1 = arith.constant 0 : i32
    return %c0_i32, %c0_i32_0 : i32, i32
  }
  func.func @transform_7(%arg0: i32) -> (i32, i32) {
    %c0_i32 = arith.constant 0 : i32
    %c0_i32_0 = arith.constant 0 : i32
    %c0_i32_1 = arith.constant 0 : i32
    return %c0_i32, %c0_i32_0 : i32, i32
  }
  func.func @transform_8(%arg0: i32) -> (i32, i32) {
    %c0_i32 = arith.constant 0 : i32
    %c0_i32_0 = arith.constant 0 : i32
    %c0_i32_1 = arith.constant 0 : i32
    return %c0_i32, %c0_i32_0 : i32, i32
  }
  func.func @transform_9(%arg0: i32) -> (i32, i32) {
    %c0_i32 = arith.constant 0 : i32
    %c0_i32_0 = arith.constant 0 : i32
    return %arg0, %c0_i32 : i32, i32
  }
  func.func @transform_10(%arg0: i32) -> (i32, i32) {
    %c0_i32 = arith.constant 0 : i32
    %c0_i32_0 = arith.constant 0 : i32
    return %arg0, %c0_i32 : i32, i32
  }
  func.func @transform_11(%arg0: i32) -> (i32, i32) {
    %c0_i32 = arith.constant 0 : i32
    %c0_i32_0 = arith.constant 0 : i32
    return %arg0, %c0_i32 : i32, i32
  }
  func.func @transform_12(%arg0: i32) -> (i32, i32) {
    %c0_i32 = arith.constant 0 : i32
    %c0_i32_0 = arith.constant 0 : i32
    return %arg0, %c0_i32 : i32, i32
  }
}

module attributes {stable_mosaic.version = 11 : i64} {
  func.func @vae_kernel(%arg0: i32, %arg1: memref<8x128xbf16, #tpu.memory_space<vmem>>, %arg2: memref<128x128xbf16, #tpu.memory_space<vmem>>, %arg3: memref<1x128xf32, #tpu.memory_space<vmem>>, %arg4: memref<128x256xbf16, #tpu.memory_space<vmem>>, %arg5: memref<1x256xf32, #tpu.memory_space<vmem>>, %arg6: memref<128x128xbf16, #tpu.memory_space<vmem>>, %arg7: memref<1x128xf32, #tpu.memory_space<vmem>>, %arg8: memref<128x128xbf16, #tpu.memory_space<vmem>>, %arg9: memref<1x128xf32, #tpu.memory_space<vmem>>, %arg10: memref<8x128xf32, #tpu.memory_space<vmem>>, %arg11: memref<8x128xf32, #tpu.memory_space<vmem>>, %arg12: memref<8x128xf32, #tpu.memory_space<vmem>>, %arg13: memref<8x128xf32, #tpu.memory_space<vmem>>) attributes {dimension_semantics = [#tpu.dimension_semantics<parallel>], iteration_bounds = array<i64: 2>, scalar_prefetch = 0 : i64, scratch_operands = 0 : i64, tpu.core_type = #tpu.core_type<tc>, window_params = [{transform_indices = @transform_0, window_bounds = array<i64: 8, 128>}, {pipeline_mode = #tpu.pipeline_mode<synchronous>, transform_indices = @transform_1, window_bounds = array<i64: 128, 128>}, {pipeline_mode = #tpu.pipeline_mode<synchronous>, transform_indices = @transform_2, window_bounds = array<i64: 1, 128>}, {pipeline_mode = #tpu.pipeline_mode<synchronous>, transform_indices = @transform_3, window_bounds = array<i64: 128, 256>}, {pipeline_mode = #tpu.pipeline_mode<synchronous>, transform_indices = @transform_4, window_bounds = array<i64: 1, 256>}, {pipeline_mode = #tpu.pipeline_mode<synchronous>, transform_indices = @transform_5, window_bounds = array<i64: 128, 128>}, {pipeline_mode = #tpu.pipeline_mode<synchronous>, transform_indices = @transform_6, window_bounds = array<i64: 1, 128>}, {pipeline_mode = #tpu.pipeline_mode<synchronous>, transform_indices = @transform_7, window_bounds = array<i64: 128, 128>}, {pipeline_mode = #tpu.pipeline_mode<synchronous>, transform_indices = @transform_8, window_bounds = array<i64: 1, 128>}, {transform_indices = @transform_9, window_bounds = array<i64: 8, 128>}, {transform_indices = @transform_10, window_bounds = array<i64: 8, 128>}, {transform_indices = @transform_11, window_bounds = array<i64: 8, 128>}, {transform_indices = @transform_12, window_bounds = array<i64: 8, 128>}]} {
    %c0 = arith.constant 0 : index
    %c0_0 = arith.constant 0 : index
    %0 = vector.load %arg1[%c0, %c0_0] : memref<8x128xbf16, #tpu.memory_space<vmem>>, vector<8x128xbf16>
    %c0_1 = arith.constant 0 : index
    %c0_2 = arith.constant 0 : index
    %1 = vector.load %arg2[%c0_1, %c0_2] : memref<128x128xbf16, #tpu.memory_space<vmem>>, vector<128x128xbf16>
    %cst = arith.constant dense<0.000000e+00> : vector<8x128xf32>
    %2 = tpu.matmul %0, %1, %cst {dimension_numbers = #tpu.dot_dimension_numbers<[1], [0], [0], [1], [0, 0, 1, 1], [], []>} : vector<8x128xbf16>, vector<128x128xbf16>, vector<8x128xf32> -> vector<8x128xf32>
    %c0_3 = arith.constant 0 : index
    %c0_4 = arith.constant 0 : index
    %3 = vector.load %arg3[%c0_3, %c0_4] : memref<1x128xf32, #tpu.memory_space<vmem>>, vector<1x128xf32>
    %4 = vector.broadcast %3 : vector<1x128xf32> to vector<8x128xf32>
    %5 = arith.addf %2, %4 : vector<8x128xf32>
    %cst_5 = arith.constant 0.000000e+00 : f32
    %6 = vector.broadcast %cst_5 : f32 to vector<8x128xf32>
    %7 = arith.cmpf ogt, %5, %6 : vector<8x128xf32>
    %cst_6 = arith.constant 0.00999999977 : f32
    %8 = vector.broadcast %cst_6 : f32 to vector<8x128xf32>
    %9 = arith.mulf %8, %5 : vector<8x128xf32>
    %10 = arith.select %7, %5, %9 : vector<8x128xi1>, vector<8x128xf32>
    %11 = arith.truncf %10 : vector<8x128xf32> to vector<8x128xbf16>
    %c0_7 = arith.constant 0 : index
    %c0_8 = arith.constant 0 : index
    %12 = vector.load %arg4[%c0_7, %c0_8] : memref<128x256xbf16, #tpu.memory_space<vmem>>, vector<128x256xbf16>
    %cst_9 = arith.constant dense<0.000000e+00> : vector<8x256xf32>
    %13 = tpu.matmul %11, %12, %cst_9 {dimension_numbers = #tpu.dot_dimension_numbers<[1], [0], [0], [1], [0, 0, 1, 1], [], []>} : vector<8x128xbf16>, vector<128x256xbf16>, vector<8x256xf32> -> vector<8x256xf32>
    %c0_10 = arith.constant 0 : index
    %c0_11 = arith.constant 0 : index
    %14 = vector.load %arg5[%c0_10, %c0_11] : memref<1x256xf32, #tpu.memory_space<vmem>>, vector<1x256xf32>
    %15 = vector.broadcast %14 : vector<1x256xf32> to vector<8x256xf32>
    %16 = arith.addf %13, %15 : vector<8x256xf32>
    %17 = vector.extract_strided_slice %16 {offsets = [0, 0], sizes = [8, 128], strides = [1, 1]} : vector<8x256xf32> to vector<8x128xf32>
    %18 = vector.extract_strided_slice %16 {offsets = [0, 128], sizes = [8, 128], strides = [1, 1]} : vector<8x256xf32> to vector<8x128xf32>
    %c0_12 = arith.constant 0 : index
    %c0_13 = arith.constant 0 : index
    %19 = vector.load %arg10[%c0_12, %c0_13] : memref<8x128xf32, #tpu.memory_space<vmem>>, vector<8x128xf32>
    %cst_14 = arith.constant 5.000000e-01 : f32
    %20 = vector.broadcast %cst_14 : f32 to vector<8x128xf32>
    %21 = arith.mulf %20, %18 : vector<8x128xf32>
    %22 = math.exp %21 : vector<8x128xf32>
    %23 = arith.mulf %19, %22 : vector<8x128xf32>
    %24 = arith.addf %17, %23 : vector<8x128xf32>
    %25 = arith.truncf %24 : vector<8x128xf32> to vector<8x128xbf16>
    %c0_15 = arith.constant 0 : index
    %c0_16 = arith.constant 0 : index
    %26 = vector.load %arg6[%c0_15, %c0_16] : memref<128x128xbf16, #tpu.memory_space<vmem>>, vector<128x128xbf16>
    %cst_17 = arith.constant dense<0.000000e+00> : vector<8x128xf32>
    %27 = tpu.matmul %25, %26, %cst_17 {dimension_numbers = #tpu.dot_dimension_numbers<[1], [0], [0], [1], [0, 0, 1, 1], [], []>} : vector<8x128xbf16>, vector<128x128xbf16>, vector<8x128xf32> -> vector<8x128xf32>
    %c0_18 = arith.constant 0 : index
    %c0_19 = arith.constant 0 : index
    %28 = vector.load %arg7[%c0_18, %c0_19] : memref<1x128xf32, #tpu.memory_space<vmem>>, vector<1x128xf32>
    %29 = vector.broadcast %28 : vector<1x128xf32> to vector<8x128xf32>
    %30 = arith.addf %27, %29 : vector<8x128xf32>
    %cst_20 = arith.constant 0.000000e+00 : f32
    %31 = vector.broadcast %cst_20 : f32 to vector<8x128xf32>
    %32 = arith.cmpf ogt, %30, %31 : vector<8x128xf32>
    %cst_21 = arith.constant 0.00999999977 : f32
    %33 = vector.broadcast %cst_21 : f32 to vector<8x128xf32>
    %34 = arith.mulf %33, %30 : vector<8x128xf32>
    %35 = arith.select %32, %30, %34 : vector<8x128xi1>, vector<8x128xf32>
    %36 = arith.truncf %35 : vector<8x128xf32> to vector<8x128xbf16>
    %c0_22 = arith.constant 0 : index
    %c0_23 = arith.constant 0 : index
    %37 = vector.load %arg8[%c0_22, %c0_23] : memref<128x128xbf16, #tpu.memory_space<vmem>>, vector<128x128xbf16>
    %cst_24 = arith.constant dense<0.000000e+00> : vector<8x128xf32>
    %38 = tpu.matmul %36, %37, %cst_24 {dimension_numbers = #tpu.dot_dimension_numbers<[1], [0], [0], [1], [0, 0, 1, 1], [], []>} : vector<8x128xbf16>, vector<128x128xbf16>, vector<8x128xf32> -> vector<8x128xf32>
    %c0_25 = arith.constant 0 : index
    %c0_26 = arith.constant 0 : index
    %39 = vector.load %arg9[%c0_25, %c0_26] : memref<1x128xf32, #tpu.memory_space<vmem>>, vector<1x128xf32>
    %40 = vector.broadcast %39 : vector<1x128xf32> to vector<8x128xf32>
    %41 = arith.addf %38, %40 : vector<8x128xf32>
    %c0_27 = arith.constant 0 : index
    %c0_28 = arith.constant 0 : index
    %42 = vector.load %arg11[%c0_27, %c0_28] : memref<8x128xf32, #tpu.memory_space<vmem>>, vector<8x128xf32>
    tpu.vector_store %arg11[%c0_27, %c0_28], %41 {strides = array<i32>} : memref<8x128xf32, #tpu.memory_space<vmem>>, vector<8x128xf32>,
    %c0_29 = arith.constant 0 : index
    %c0_30 = arith.constant 0 : index
    %43 = vector.load %arg12[%c0_29, %c0_30] : memref<8x128xf32, #tpu.memory_space<vmem>>, vector<8x128xf32>
    tpu.vector_store %arg12[%c0_29, %c0_30], %17 {strides = array<i32>} : memref<8x128xf32, #tpu.memory_space<vmem>>, vector<8x128xf32>,
    %c0_31 = arith.constant 0 : index
    %c0_32 = arith.constant 0 : index
    %44 = vector.load %arg13[%c0_31, %c0_32] : memref<8x128xf32, #tpu.memory_space<vmem>>, vector<8x128xf32>
    tpu.vector_store %arg13[%c0_31, %c0_32], %18 {strides = array<i32>} : memref<8x128xf32, #tpu.memory_space<vmem>>, vector<8x128xf32>,
    return
  }
  func.func @transform_0(%arg0: i32) -> (i32, i32) {
    %c0_i32 = arith.constant 0 : i32
    %c0_i32_0 = arith.constant 0 : i32
    return %arg0, %c0_i32 : i32, i32
  }
  func.func @transform_1(%arg0: i32) -> (i32, i32) {
    %c0_i32 = arith.constant 0 : i32
    %c0_i32_0 = arith.constant 0 : i32
    %c0_i32_1 = arith.constant 0 : i32
    return %c0_i32, %c0_i32_0 : i32, i32
  }
  func.func @transform_2(%arg0: i32) -> (i32, i32) {
    %c0_i32 = arith.constant 0 : i32
    %c0_i32_0 = arith.constant 0 : i32
    %c0_i32_1 = arith.constant 0 : i32
    return %c0_i32, %c0_i32_0 : i32, i32
  }
  func.func @transform_3(%arg0: i32) -> (i32, i32) {
    %c0_i32 = arith.constant 0 : i32
    %c0_i32_0 = arith.constant 0 : i32
    %c0_i32_1 = arith.constant 0 : i32
    return %c0_i32, %c0_i32_0 : i32, i32
  }
  func.func @transform_4(%arg0: i32) -> (i32, i32) {
    %c0_i32 = arith.constant 0 : i32
    %c0_i32_0 = arith.constant 0 : i32
    %c0_i32_1 = arith.constant 0 : i32
    return %c0_i32, %c0_i32_0 : i32, i32
  }
  func.func @transform_5(%arg0: i32) -> (i32, i32) {
    %c0_i32 = arith.constant 0 : i32
    %c0_i32_0 = arith.constant 0 : i32
    %c0_i32_1 = arith.constant 0 : i32
    return %c0_i32, %c0_i32_0 : i32, i32
  }
  func.func @transform_6(%arg0: i32) -> (i32, i32) {
    %c0_i32 = arith.constant 0 : i32
    %c0_i32_0 = arith.constant 0 : i32
    %c0_i32_1 = arith.constant 0 : i32
    return %c0_i32, %c0_i32_0 : i32, i32
  }
  func.func @transform_7(%arg0: i32) -> (i32, i32) {
    %c0_i32 = arith.constant 0 : i32
    %c0_i32_0 = arith.constant 0 : i32
    %c0_i32_1 = arith.constant 0 : i32
    return %c0_i32, %c0_i32_0 : i32, i32
  }
  func.func @transform_8(%arg0: i32) -> (i32, i32) {
    %c0_i32 = arith.constant 0 : i32
    %c0_i32_0 = arith.constant 0 : i32
    %c0_i32_1 = arith.constant 0 : i32
    return %c0_i32, %c0_i32_0 : i32, i32
  }
  func.func @transform_9(%arg0: i32) -> (i32, i32) {
    %c0_i32 = arith.constant 0 : i32
    %c0_i32_0 = arith.constant 0 : i32
    return %arg0, %c0_i32 : i32, i32
  }
  func.func @transform_10(%arg0: i32) -> (i32, i32) {
    %c0_i32 = arith.constant 0 : i32
    %c0_i32_0 = arith.constant 0 : i32
    return %arg0, %c0_i32 : i32, i32
  }
  func.func @transform_11(%arg0: i32) -> (i32, i32) {
    %c0_i32 = arith.constant 0 : i32
    %c0_i32_0 = arith.constant 0 : i32
    return %arg0, %c0_i32 : i32, i32
  }
  func.func @transform_12(%arg0: i32) -> (i32, i32) {
    %c0_i32 = arith.constant 0 : i32
    %c0_i32_0 = arith.constant 0 : i32
    return %arg0, %c0_i32 : i32, i32
  }
}

</mosaic_0001>

<bundles_post_ra>
// kernel: tpu_custom_call.1
= control target key start
LH: loop header
LB: loop body
LE: loop exit
PB: predicated region body
PF: predicated region fallthrough
CT: control target
= control target key end

     0   :  { %s2331_s0 = inlined_call_operand.hbm [shape: bf16[16,128], index: 0, kind: input, shape index: {}]   ;;  %s2332_s1 = inlined_call_operand.hbm [shape: bf16[128,128], index: 1, kind: input, shape index: {}]   ;;  %s2333_s2 = inlined_call_operand.vmem [shape: f32[1,128], index: 2, kind: input, shape index: {}]   ;;  %s2334_s3 = inlined_call_operand.hbm [shape: bf16[128,256], index: 3, kind: input, shape index: {}]   ;;  %s2335_s4 = inlined_call_operand.vmem [shape: f32[1,256], index: 4, kind: input, shape index: {}]   ;;  %s2336_s5 = inlined_call_operand.hbm [shape: bf16[128,128], index: 5, kind: input, shape index: {}]   ;;  %s2337_s6 = inlined_call_operand.vmem [shape: f32[1,128], index: 6, kind: input, shape index: {}]   ;;  %s2338_s7 = inlined_call_operand.hbm [shape: bf16[128,128], index: 7, kind: input, shape index: {}]   ;;  %s2339_s8 = inlined_call_operand.vmem [shape: f32[1,128], index: 8, kind: input, shape index: {}]   ;;  %s2340_s9 = inlined_call_operand.vmem [shape: f32[16,128], index: 9, kind: input, shape index: {}]   ;;  %s2341_s10 = inlined_call_operand.hbm [shape: f32[16,128], index: 10, kind: output, shape index: {0}]   ;;  %s2342_s11 = inlined_call_operand.hbm [shape: f32[16,128], index: 11, kind: output, shape index: {1}]   ;;  %s2343_s12 = inlined_call_operand.hbm [shape: f32[16,128], index: 12, kind: output, shape index: {2}]  }
   0x1   :  { %2353 = sst [smem:[#allocation20_spill]] %s2331_s0 }
   0x2   :  { %2354 = sst [smem:[#allocation21_spill]] %s2332_s1 }
   0x3   :  { %2355 = sst [smem:[#allocation22_spill]] %s2333_s2 }
   0x4   :  { %2356 = sst [smem:[#allocation23_spill]] %s2334_s3 }
   0x5   :  { %2357 = sst [smem:[#allocation24_spill]] %s2339_s8 }
   0x6   :  { %2358 = sst [smem:[#allocation25_spill]] %s2341_s10 }
   0x7   :  { %2359 = sst [smem:[#allocation26_spill]] %s2342_s11 }
   0x8   :  { %2360 = sst [smem:[#allocation27_spill]] %s2343_s12 }
   0x9   :  { %18 = vsyncpa [#allocation3], 0 }
   0xa   :  { %20 = vsyncpa [#allocation3 + $0x1], 0 }
   0xb   :  { %21 = vsyncpa [#allocation6], 0 }
   0xc   :  { %22 = vsyncpa [#allocation9], 0 }
   0xd   :  { %23 = vsyncpa [#allocation4], 0 }
   0xe   :  { %25 = vsyncpa [#allocation4 + $0x1], 0 }
   0xf   :  { %26 = vsyncpa [#allocation13], 0 }
  0x10   :  { %28 = vsyncpa [#allocation13 + $0x1], 0  ;;  %s1924_s21 = smov 0   ;;  %s1926_s22 = smov 0  }
  0x11   :  { %s1928_s23 = smov 0   ;;  %s1930_s24 = smov 0  }
  0x12 LB: > { %s1844_s25 = smov [#allocation5]   ;;  %s1945_s27 = sadd.s32 4294967295, %s1842_s24   ;;  %s1842_s24 = sphi %s1930_s24, %s2392_s24   ;;  %s1838_s23 = sphi %s1928_s23, %s2391_s23   ;;  %s1834_s22 = sphi %s1926_s22, %s2390_s22   ;;  %s1830_s21 = sphi %s1924_s21, %s2389_s21  }
  0x13   : > { %s349_s26 = sshll.u32 %s1844_s25, 4  ;;  %p1256_p0 = scmp.ge.s32.totalorder %s1842_s24, 1  ;;  %s1950_s26 = int_to_ptr.vmem [resolvable:$true] %s349_s26 }
  0x14   : > { %p2349_p1 = scmp.eq.s32.totalorder %s1945_s27, 0  ;;  %p337_p2 = scmp.lt.s32.totalorder %s1842_s24, 3 }
  0x15   : > { %s1845_s29 = smov [#allocation8]   ;;  %s1846_s14 = smov [#allocation7]  }
  0x16   : > { %p1952_p3 = pnand %p1256_p0, %p337_p2  ;;  %s381_s30 = sshll.u32 %s1845_s29, 4  ;;  %s1965_s30 = int_to_ptr.vmem [resolvable:$true] %s381_s30 }
  0x17   : > { %s365_s15 = sshll.u32 %s1846_s14, 4  ;;  %s2363_s1 = sld [smem:[#allocation21_spill]]  ;;  %s1967_s15 = int_to_ptr.vmem [resolvable:$true] %s365_s15 }
  0x18   : > { %s2361_s28 = scalar_select %p1952_p3, 1, 0 }
  0x19   : > { %p1436_p5 = pneg %p1952_p3 }
  0x1b   : > { %p1961_p6 = pnand %p1436_p5, %p2349_p1 }
  0x1d   : > { %s1566_s18 = scalar_lea.hbm %s2363_s1, 1024  ;;  %p1977_p8 = pneg %p1961_p6 }
  0x1e   : > { %p1567_p7 = scmp.ne.s32.totalorder %s2363_s1, %s1566_s18  ;;  %p1573_p11 = scmp.lt.u32.totalorder %s1566_s18, %s2363_s1 }
  0x20   : > { %p1569_p9 = pnand %p1977_p8, %p1567_p7 }
  0x22   : > { %p1570_p10 = pneg %p1569_p9 }
  0x24   : > { %p1575_p12 = pnand %p1573_p11, %p1570_p10 }
  0x26   : > { %1578 = shalt.err (!%p1575_p12)
}
  0x27   : > { %s1579_s16 = scalar_lea.vmem %s1950_s26, 1024  ;;  %p1587_p5 = scmp.lt.s32.totalorder %s1950_s26, %s1950_s26 }
  0x28   : > { %p1580_p13 = scmp.ne.s32.totalorder %s1950_s26, %s1579_s16  ;;  %p1588_p4 = scmp.lt.s32.totalorder %s1579_s16, %s1579_s16 }
  0x2a   : > { %p1582_p0 = pnand %p1580_p13, %p1977_p8  ;;  %p1589_p7 = por %p1588_p4, %p1587_p5 }
  0x2c   : > { %p1583_p2 = pneg %p1582_p0 }
  0x2e   : > { %p1590_p9 = pnand %p1589_p7, %p1583_p2 }
  0x30   : > { %1593 = shalt.err (!%p1590_p9)
}
  0x31   : > { %s2347_s17 = smov 64   ;;  %s2348_s18 = smov 4  }
  0x32   : > { %1439 = dma.hbm_to_vmem [thread:$0]  (!%p1961_p6), %s2363_s1, 1024, %s1950_s26, [#allocation6], %s2347_s17, %s2347_s17, %s2348_s18  }
  0x33   : > { %s1594_s16 = scalar_lea.hbm %s2336_s5, 1024 }
  0x34   : > { %p1595_p4 = scmp.ne.s32.totalorder %s2336_s5, %s1594_s16  ;;  %p1601_p12 = scmp.lt.u32.totalorder %s1594_s16, %s2336_s5 }
  0x36   : > { %p1597_p10 = pnand %p1595_p4, %p1977_p8 }
  0x38   : > { %p1598_p11 = pneg %p1597_p10 }
  0x3a   : > { %p1603_p13 = pnand %p1601_p12, %p1598_p11 }
  0x3c   : > { %1606 = shalt.err (!%p1603_p13)
}
  0x3d   : > { %s1607_s26 = scalar_lea.vmem %s1965_s30, 1024  ;;  %p1615_p7 = scmp.lt.s32.totalorder %s1965_s30, %s1965_s30 }
  0x3e   : > { %p1608_p0 = scmp.ne.s32.totalorder %s1965_s30, %s1607_s26  ;;  %p1616_p9 = scmp.lt.s32.totalorder %s1607_s26, %s1607_s26 }
  0x40   : > { %p1610_p2 = pnand %p1608_p0, %p1977_p8  ;;  %p1617_p4 = por %p1616_p9, %p1615_p7 }
  0x42   : > { %p1611_p5 = pneg %p1610_p2 }
  0x44   : > { %p1618_p10 = pnand %p1617_p4, %p1611_p5 }
  0x46   : > { %1621 = shalt.err (!%p1618_p10)
}
  0x47   : > { %1445 = dma.hbm_to_vmem [thread:$0]  (!%p1961_p6), %s2336_s5, 1024, %s1965_s30, [#allocation9], %s2347_s17, %s2347_s17, %s2348_s18  }
  0x48   : > { %s2365_s3 = sld [smem:[#allocation23_spill]] }
  0x4e   : > { %s1622_s19 = scalar_lea.hbm %s2365_s3, 2048 }
  0x4f   : > { %p1623_p11 = scmp.ne.s32.totalorder %s2365_s3, %s1622_s19  ;;  %p1629_p0 = scmp.lt.u32.totalorder %s1622_s19, %s2365_s3 }
  0x51   : > { %p1625_p12 = pnand %p1623_p11, %p1977_p8 }
  0x53   : > { %p1626_p13 = pneg %p1625_p12 }
  0x55   : > { %p1631_p2 = pnand %p1629_p0, %p1626_p13 }
  0x57   : > { %1634 = shalt.err (!%p1631_p2)
}
  0x58   : > { %s1635_s30 = scalar_lea.vmem %s1967_s15, 2048  ;;  %p1643_p4 = scmp.lt.s32.totalorder %s1967_s15, %s1967_s15 }
  0x59   : > { %p1636_p5 = scmp.ne.s32.totalorder %s1967_s15, %s1635_s30  ;;  %p1644_p10 = scmp.lt.s32.totalorder %s1635_s30, %s1635_s30 }
  0x5b   : > { %p1638_p7 = pnand %p1636_p5, %p1977_p8  ;;  %p1645_p11 = por %p1644_p10, %p1643_p4 }
  0x5d   : > { %p1639_p9 = pneg %p1638_p7 }
  0x5f   : > { %p1646_p12 = pnand %p1645_p11, %p1639_p9 }
  0x61   : > { %1649 = shalt.err (!%p1646_p12)
}
  0x62   : > { %s1849_s26 = smov 128   ;;  %s1850_s8 = smov 8  }
  0x63   : > { %1442 = dma.hbm_to_vmem [thread:$0]  (!%p1961_p6), %s2365_s3, 2048, %s1967_s15, [#allocation6], %s1849_s26, %s1849_s26, %s1850_s8  }
  0x64   : > { %s1851_s12 = smov [#allocation10]   ;;  %s1650_s14 = scalar_lea.hbm %s2338_s7, 1024 }
  0x65   : > { %s397_s19 = sshll.u32 %s1851_s12, 4  ;;  %p1651_p13 = scmp.ne.s32.totalorder %s2338_s7, %s1650_s14  ;;  %s398_s19 = int_to_ptr.vmem [resolvable:$true] %s397_s19 }
  0x66   : > { %p1657_p5 = scmp.lt.u32.totalorder %s1650_s14, %s2338_s7 }
  0x67   : > { %p1653_p0 = pnand %p1651_p13, %p1977_p8 }
  0x69   : > { %p1654_p2 = pneg %p1653_p0 }
  0x6b   : > { %p1659_p7 = pnand %p1657_p5, %p1654_p2 }
  0x6d   : > { %1662 = shalt.err (!%p1659_p7)
}
  0x6e   : > { %s1663_s15 = scalar_lea.vmem %s398_s19, 1024  ;;  %p1671_p11 = scmp.lt.s32.totalorder %s398_s19, %s398_s19 }
  0x6f   : > { %p1664_p9 = scmp.ne.s32.totalorder %s398_s19, %s1663_s15  ;;  %p1672_p12 = scmp.lt.s32.totalorder %s1663_s15, %s1663_s15 }
  0x71   : > { %p1666_p4 = pnand %p1664_p9, %p1977_p8  ;;  %p1673_p1 = por %p1672_p12, %p1671_p11 }
  0x73   : > { %p1667_p10 = pneg %p1666_p4 }
  0x75   : > { %p1674_p3 = pnand %p1673_p1, %p1667_p10 }
  0x77   : > { %1677 = shalt.err (!%p1674_p3)
}
  0x78   : > { %s2366_s26 = smov 4   ;;  %s2367_s8 = smov 64  }
  0x79   : > { %1448 = dma.hbm_to_vmem [thread:$0]  (!%p1961_p6), %s2338_s7, 1024, %s398_s19, [#allocation9], %s2367_s8, %s2367_s8, %s2366_s26  }
  0x7a   : > { %s2351_s13 = sadd.s32 4294967294, %s1842_s24   ;;  %s2073_s25 = sadd.s32 1, %s1842_s24  }
  0x7b   : > { %s38_s10 = ssub.s32 %s1842_s24, %s2073_s25  ;;  %s41_s11 = sadd.s32 1, %s1838_s23 }
  0x7c   : > { %p39_p1 = scmp.eq.s32.totalorder %s38_s10, 0  ;;  %p48_p3 = scmp.ne.s32.totalorder %s1838_s23, %s1834_s22 }
  0x7d   : > { %p49_p8 = scmp.eq.s32.totalorder %s1842_s24, 0  ;;  %p54_p13 = scmp.ne.s32.totalorder %s1834_s22, %s1830_s21 }
  0x7e   : > { %s2084_s12 = scalar_select %p39_p1, %s1838_s23, %s41_s11  }
  0x7f   : > { %p2086_p0 = por %p49_p8, %p48_p3  ;;  %p2369_p2 = scmp.eq.s32.totalorder %s1945_s27, 0 }
  0x80   : > { %p272_p5 = scmp.eq.s32.totalorder %s1945_s27, 1  ;;  %p278_p7 = scmp.eq.s32.totalorder %s2351_s13, 1 }
  0x81   : > { %p2092_p6 = por %p2369_p2, %p54_p13  ;;  %p1467_p9 = scmp.lt.s32.totalorder %s1842_s24, 2 }
  0x82   : > { %s414_s29 = sand.u32 1, %s1838_s23   ;;  %p2101_p4 = por %p272_p5, %p48_p3 }
  0x83   : > { %p2105_p10 = por %p278_p7, %p54_p13  ;;  %s1262_s30 = sshll.u32 %s414_s29, 2 }
  0x84   : > { %s2371_s14 = scalar_select %p2101_p4, 1, 0 }
  0x85   : > { %s2372_s16 = scalar_select %p2105_p10, 1, 0 }
  0x86   : > { %s1263_s15 = sshll.u32 %s1842_s24, 6  ;;  %s2373_s0 = sld [smem:[#allocation20_spill]] }
  0x87   : > { %s418_s18 = scalar_lea.vmem [#allocation2], %s1262_s30  ;;  %p2119_p11 = pnand %p1467_p9, %p2086_p0 }
  0x88   : > { %s425_s10 = sshll.u32 %s418_s18, 4  ;;  %s415_s13 = scalar_lea.sflag [#allocation3], %s414_s29  ;;  %s2115_s10 = int_to_ptr.vmem [resolvable:$true] %s425_s10 }
  0x89   : > { %p1680_p1 = pneg %p2119_p11 }
  0x8c   : > { %s2113_s17 = scalar_lea.hbm %s2373_s0, %s1263_s15  ;;  %s1683_s26 = scalar_lea.hbm %s2373_s0, 128 }
  0x8d   : > { %s1678_s1 = scalar_lea.hbm %s2113_s17, 64  ;;  %p1684_p13 = scmp.lt.u32.totalorder %s2113_s17, %s2373_s0 }
  0x8e   : > { %p1679_p12 = scmp.ne.s32.totalorder %s2113_s17, %s1678_s1  ;;  %p1685_p0 = scmp.lt.u32.totalorder %s1683_s26, %s1678_s1 }
  0x8f   : > { %p1687_p5 = scmp.lt.u32.totalorder %s1678_s1, %s2113_s17 }
  0x90   : > { %p1681_p3 = pnand %p1680_p1, %p1679_p12  ;;  %p1686_p2 = por %p1685_p0, %p1684_p13 }
  0x92   : > { %p1682_p8 = pneg %p1681_p3  ;;  %p1688_p7 = por %p1687_p5, %p1686_p2 }
  0x94   : > { %p1689_p9 = pnand %p1688_p7, %p1682_p8 }
  0x96   : > { %1692 = shalt.err (!%p1689_p9)
}
  0x97   : > { %s1693_s29 = scalar_lea.vmem %s2115_s10, 64  ;;  %s1852_s18 = smov [#allocation2]  }
  0x98   : > { %p1694_p12 = scmp.ne.s32.totalorder %s2115_s10, %s1693_s29  ;;  %s1698_s30 = sshll.u32 %s1852_s18, 4  ;;  %s1699_s30 = int_to_ptr.vmem [resolvable:$false] %s1698_s30 }
  0x99   : > { %s1700_s15 = scalar_lea.vmem %s1699_s30, 128  ;;  %p1701_p4 = scmp.lt.s32.totalorder %s2115_s10, %s1699_s30 }
  0x9a   : > { %p1696_p3 = pnand %p1694_p12, %p1680_p1  ;;  %p1702_p13 = scmp.lt.s32.totalorder %s1700_s15, %s1693_s29 }
  0x9c   : > { %p1697_p10 = pneg %p1696_p3  ;;  %p1703_p0 = por %p1702_p13, %p1701_p4 }
  0x9e   : > { %p1704_p2 = pnand %p1703_p0, %p1697_p10 }
  0xa0   : > { %1707 = shalt.err (!%p1704_p2)
}
  0xa1   : > { %1452 = dma.hbm_to_vmem [thread:$0]  (!%p2119_p11), %s2113_s17, 64, %s2115_s10, %s415_s13  }
  0xa2   : > { %p2375_p8 = scmp.ne.s32.totalorder %s2361_s28, 0 }
  0xa3   : > { %s2151_s1 = sand.u32 (!%p2375_p8), 1, %s1834_s22  }
  0xa4   : > { %441 = sbr.rel (%p2375_p8) target bundleno = 1113 (0x459), region = 60  ;;  %s1265_s26 = sshll.u32 (!%p2375_p8), %s2151_s1, 2 }
  0xa5   : > { %s444_s20 = scalar_lea.sflag (!%p2375_p8), [#allocation3], %s2151_s1  ;;  %s2155_s8 = scalar_lea.vmem (!%p2375_p8), [#allocation2], %s1265_s26 }
  0xab   : > { %1809 = dma.done.wait (%p2092_p6), %s444_s20, 64  }
  0xac   : > { %1811 = vsyncadd (%p2092_p6), %s444_s20, 4294967232  ;;  %p2376_p4 = scmp.eq.s32.totalorder %s1945_s27, 0 }
  0xae   : > { %1813 = dma.done.wait (%p2376_p4), [#allocation6], 3072   ;;  %p2377_p10 = pmov %p2376_p4 }
  0xaf   : > { %p2378_p11 = pmov %p2376_p4 }
  0xb0   : > { %1815 = vsyncadd (%p2377_p10), [#allocation6], 4294964224 }
  0xb1   : > { %1817 = dma.done.wait (%p2378_p11), [#allocation9], 2048   ;;  %p2379_p1 = pmov %p2376_p4 }
  0xb2   : > { %v1853_v0 = vmov 0.0   ;;  %vm1854_vm0 = vmmov 0   ;;  %v1516_v1 = vld [vmem:[#allocation5] sm:$0xff]   ;;  %v1517_v2 = vld [vmem:[#allocation5 + $0x8] sm:$0xff]   ;;  %v1518_v3 = vld [vmem:[#allocation5 + $0x10] sm:$0xff]   ;;  %v1855_v26 = vmov 0   ;;  %v657_v50 = vlaneseq }
  0xb3   : > { %1819 = vsyncadd (%p2379_p1), [#allocation9], 4294965248  ;;  %1352 = vmatprep.subr.bf16.mxu0 %v1853_v0  ;;  %1368 = vmatprep.mubr.msk.bf16.mxu0 %vm1854_vm0, %v1853_v0  ;;  %v1524_v4 = vld [vmem:[#allocation7 + $0x4] ss:$8 sps:$4 sm:$0xff]   ;;  %v1526_v5 = vld [vmem:[#allocation7] ss:$8 sps:$4 sm:$0xff]  }
  0xb4   : > { %1353 = vmatpush3.bf16.msra.mxu0 %v1516_v1  ;;  %v1519_v6 = vld [vmem:[#allocation5 + $0x18] sm:$0xff]   ;;  %747 = vmatprep.subr.bf16.mxu1 %v1524_v4  ;;  %v1530_v9 = vld [vmem:[#allocation7 + $0x24] ss:$8 sps:$4 sm:$0xff]   ;;  %v1532_v12 = vld [vmem:[#allocation7 + $0x20] ss:$8 sps:$4 sm:$0xff]   ;;  %s2380_s2 = sld [smem:[#allocation22_spill]] }
  0xb5   : > { %1354 = vmatprep.subr.bf16.mxu0 %v1853_v0  ;;  %v1527_v7 = vld [vmem:[#allocation7 + $0x14] ss:$8 sps:$4 sm:$0xff]   ;;  %748 = vmatpush1.bf16.msra.mxu1 %v1526_v5  ;;  %v1529_v8 = vld [vmem:[#allocation7 + $0x10] ss:$8 sps:$4 sm:$0xff]   ;;  %v1520_v10 = vld [vmem:[#allocation5 + $0x20] sm:$0xff]   ;;  %v658_v51 = vshrl.u32 %v657_v50, 7 }
  0xb6   : > { %749 = vmatprep.subr.bf16.mxu1 %v1527_v7  ;;  %v1521_v11 = vld [vmem:[#allocation5 + $0x28] sm:$0xff]   ;;  %v1533_v13 = vld [vmem:[#allocation7 + $0x34] ss:$8 sps:$4 sm:$0xff]   ;;  %v1535_v14 = vld [vmem:[#allocation7 + $0x30] ss:$8 sps:$4 sm:$0xff]   ;;  %779 = vmatprep.mubr.bf16.mxu1 %v1855_v26  ;;  %s2206_s10 = sshll.u32 %s2151_s1, 3 }
  0xb7   : > { %v1536_v15 = vld [vmem:[#allocation7 + $0x44] ss:$8 sps:$4 sm:$0xff]   ;;  %v1522_v16 = vld [vmem:[#allocation5 + $0x30] sm:$0xff]   ;;  %v1538_v17 = vld [vmem:[#allocation7 + $0x40] ss:$8 sps:$4 sm:$0xff]   ;;  %v659_v52 = vsub.s32 0, %v658_v51 }
  0xb8   : > { %1355 = vmatpush3.bf16.msra.mxu0 %v1517_v2  ;;  %v1539_v18 = vld [vmem:[#allocation7 + $0x54] ss:$8 sps:$4 sm:$0xff]   ;;  %v1541_v20 = vld [vmem:[#allocation7 + $0x50] ss:$8 sps:$4 sm:$0xff]   ;;  %v1542_v22 = vld [vmem:[#allocation7 + $0x64] ss:$8 sps:$4 sm:$0xff]  }
  0xb9   : > { %1356 = vmatprep.subr.bf16.mxu0 %v1853_v0  ;;  %750 = vmatpush1.bf16.msra.mxu1 %v1529_v8  ;;  %v1523_v19 = vld [vmem:[#allocation5 + $0x38] sm:$0xff]   ;;  %v1544_v23 = vld [vmem:[#allocation7 + $0x60] ss:$8 sps:$4 sm:$0xff]   ;;  %v1550_v38 = vld [vmem:[#allocation8 + $0x10] sm:$0xff]   ;;  %v663_v54 = vsub.s32 1, %v658_v51  ;;  %p518_p6 = scmp.lt.s32.totalorder %s1945_s27, 1 }
  0xba   : > { %751 = vmatprep.subr.bf16.mxu1 %v1530_v9  ;;  %v523_v21 = vld [vmem:[%s2155_s8] sm:$0xf]  ;;  %v1548_v27 = vld [vmem:[#allocation8] sm:$0xff]   ;;  %v1549_v28 = vld [vmem:[#allocation8 + $0x8] sm:$0xff]   ;;  %s510_s11 = scalar_lea.vmem [#allocation12], %s2206_s10  ;;  %s517_s29 = scalar_lea.vmem [#allocation14], %s2206_s10 }
  0xbb   : > { %v1545_v24 = vld [vmem:[#allocation7 + $0x74] ss:$8 sps:$4 sm:$0xff]   ;;  %v1547_v25 = vld [vmem:[#allocation7 + $0x70] ss:$8 sps:$4 sm:$0xff]   ;;  %v1274_v29 = vld [vmem:[%s2380_s2] ss:$0 sm:$0xff] }
  0xbc   : > { %1357 = vmatpush3.bf16.msra.mxu0 %v1518_v3  ;;  %v1551_v39 = vld [vmem:[#allocation8 + $0x18] sm:$0xff]   ;;  %v1552_v40 = vld [vmem:[#allocation8 + $0x20] sm:$0xff]   ;;  %v1553_v41 = vld [vmem:[#allocation8 + $0x28] sm:$0xff]   ;;  %s519_s18 = scalar_select %p518_p6, %s1945_s27, 1 }
  0xbd   : > { %1358 = vmatprep.subr.bf16.mxu0 %v1853_v0  ;;  %752 = vmatpush1.bf16.msra.mxu1 %v1532_v12  ;;  %v1554_v42 = vld [vmem:[#allocation8 + $0x30] sm:$0xff]   ;;  %v1555_v43 = vld [vmem:[#allocation8 + $0x38] sm:$0xff]   ;;  %v1556_v44 = vld [vmem:[#allocation10] sm:$0xff]   ;;  %s1029_s13 = sand.u32 1, %s1945_s27   ;;  %s2225_s19 = sshll.u32 %s1945_s27, 7 }
  0xbe   : > { %753 = vmatprep.subr.bf16.mxu1 %v1533_v13  ;;  %v1557_v45 = vld [vmem:[#allocation10 + $0x8] sm:$0xff]   ;;  %v1558_v46 = vld [vmem:[#allocation10 + $0x10] sm:$0xff]   ;;  %v1559_v47 = vld [vmem:[#allocation10 + $0x18] sm:$0xff]   ;;  %s1273_s30 = sshll.u32 %s519_s18, 3  ;;  %s1061_s26 = sshll.u32 %s510_s11, 4  ;;  %s1062_s26 = int_to_ptr.vmem [resolvable:$true] %s1061_s26 }
  0xbf   : > { %v1560_v48 = vld [vmem:[#allocation10 + $0x20] sm:$0xff]   ;;  %v1561_v49 = vld [vmem:[#allocation10 + $0x28] sm:$0xff]   ;;  %s521_s20 = scalar_lea.vmem %s2340_s9, %s1273_s30  ;;  %v1562_v7 = vld [vmem:[#allocation10 + $0x30] sm:$0xff]   ;;  %s2381_s30 = sld [smem:[#allocation26_spill]] }
  0xc0   : > { %1359 = vmatpush3.bf16.msra.mxu0 %v1519_v6  ;;  %v655_v53 = vld [vmem:[%s2335_s4] sm:$0x3]  ;;  %v1563_v8 = vld [vmem:[#allocation10 + $0x38] sm:$0xff]   ;;  %s2239_s8 = scalar_lea.sflag [#allocation13], %s1029_s13  ;;  %s1708_s28 = scalar_lea.vmem %s1062_s26, 128 }
  0xc1   : > { %1360 = vmatprep.subr.bf16.mxu0 %v1853_v0  ;;  %754 = vmatpush1.bf16.msra.mxu1 %v1535_v14  ;;  %v660_v55 = vrot.slane %v655_v53, %v659_v52  ;;  %v664_v56 = vrot.slane %v655_v53, %v663_v54  ;;  %v788_v2 = vld [vmem:[%s521_s20] sm:$0xff]  ;;  %s2237_s20 = sshll.u32 %s517_s29, 4  ;;  %p1709_p5 = scmp.ne.s32.totalorder %s1062_s26, %s1708_s28  ;;  %s1075_s20 = int_to_ptr.vmem [resolvable:$true] %s2237_s20 }
  0xc2   : > { %755 = vmatprep.subr.bf16.mxu1 %v1536_v15  ;;  %v1299_v9 = vld [vmem:[%s2337_s6] ss:$0 sm:$0xff]  ;;  %p2382_p7 = scmp.ne.s32.totalorder %s2371_s14, 0  ;;  %s1856_s27 = smov [#allocation12]  }
  0xc3   : > { %s1712_s0 = sshll.u32 %s1856_s27, 4  ;;  %s1713_s0 = int_to_ptr.vmem [resolvable:$false] %s1712_s0 }
  0xc4   : > { %1361 = vmatpush3.bf16.msra.mxu0 %v1520_v10  ;;  %p1710_p9 = pnand %p1709_p5, %p2382_p7  ;;  %s1714_s2 = scalar_lea.vmem %s1713_s0, 256 }
  0xc5   : > { %1362 = vmatprep.subr.bf16.mxu0 %v1853_v0  ;;  %756 = vmatpush1.bf16.msra.mxu1 %v1538_v17  ;;  %s2231_s15 = scalar_lea.hbm %s2381_s30, %s2225_s19  ;;  %p1715_p3 = scmp.lt.s32.totalorder %s1062_s26, %s1713_s0 }
  0xc6   : > { %757 = vmatprep.subr.bf16.mxu1 %v1539_v18  ;;  %p1711_p12 = pneg %p1710_p9  ;;  %p1716_p13 = scmp.lt.s32.totalorder %s1714_s2, %s1708_s28 }
  0xc8   : > { %1363 = vmatpush3.bf16.msra.mxu0 %v1521_v11  ;;  %p1717_p0 = por %p1716_p13, %p1715_p3 }
  0xc9   : > { %1364 = vmatprep.subr.bf16.mxu0 %v1853_v0  ;;  %758 = vmatpush1.bf16.msra.mxu1 %v1541_v20 }
  0xca   : > { %759 = vmatprep.subr.bf16.mxu1 %v1542_v22  ;;  %p1718_p2 = pnand %p1717_p0, %p1711_p12 }
  0xcc   : > { %1365 = vmatpush3.bf16.msra.mxu0 %v1522_v16 }
  0xcd   : > { %1366 = vmatprep.subr.bf16.mxu0 %v1853_v0  ;;  %760 = vmatpush1.bf16.msra.mxu1 %v1544_v23 }
  0xce   : > { %761 = vmatprep.subr.bf16.mxu1 %v1545_v24 }
  0xd0   : > { %1367 = vmatpush3.bf16.msra.mxu0 %v1523_v19 }
  0xd1   : > { %1372 = vmatprep.subr.bf16.mxu0 %v1853_v0  ;;  %762 = vmatpush1.bf16.msra.mxu1 %v1547_v25 }
  0xd2   : > { %1392 = vmatprep.subr.bf16.mxu1 %v1853_v0 }
  0xd3   : > { %1369 = vmatmul.mubr.bf16.vlgmr.msra.gmra.mrb[0].mxu0 %v523_v21 }
  0xd4   : > { %1388 = vmatprep.mubr.msk.bf16.mxu0 %vm1854_vm0, %v1853_v0  ;;  %1373 = vmatpush3.bf16.msra.mxu0 %v1548_v27 }
  0xd5   : > { %1374 = vmatprep.subr.bf16.mxu0 %v1853_v0 }
  0xd8   : > { %1375 = vmatpush3.bf16.msra.mxu0 %v1549_v28 }
  0xd9   : > { %1376 = vmatprep.subr.bf16.mxu0 %v1853_v0 }
  0xdc   : > { %1377 = vmatpush3.bf16.msra.mxu0 %v1550_v38 }
  0xdd   : > { %1378 = vmatprep.subr.bf16.mxu0 %v1853_v0 }
  0xe0   : > { %1379 = vmatpush3.bf16.msra.mxu0 %v1551_v39 }
  0xe1   : > { %1380 = vmatprep.subr.bf16.mxu0 %v1853_v0 }
  0xe4   : > { %1381 = vmatpush3.bf16.msra.mxu0 %v1552_v40 }
  0xe5   : > { %1382 = vmatprep.subr.bf16.mxu0 %v1853_v0 }
  0xe8   : > { %1383 = vmatpush3.bf16.msra.mxu0 %v1553_v41 }
  0xe9   : > { %1384 = vmatprep.subr.bf16.mxu0 %v1853_v0 }
  0xec   : > { %1385 = vmatpush3.bf16.msra.mxu0 %v1554_v42 }
  0xed   : > { %1386 = vmatprep.subr.bf16.mxu0 %v1853_v0 }
  0xf0   : > { %1387 = vmatpush3.bf16.msra.mxu0 %v1555_v43 }
 0x1a6   : > { %v629_v30 = vpop.f32.mrb[0].mxu0 }
 0x1a7   : > { %v630_v31 = vadd.f32 %v1274_v29, %v629_v30  ;;  %v1370_v32 = vpop.f32.mrb[1].mxu0 }
 0x1a8   : > { %v632_v33 = vpop.f32.mrb[2].mxu0 }
 0x1a9   : > { %vm635_vm1 = vcmp.gt.f32.partialorder %v630_v31, 0.0  ;;  %v636_v34 = vmul.f32 0.01, %v630_v31  ;;  %v1371_v35 = vpop.f32.mrb[3].mxu0 }
 0x1ab   : > { %v637_v36 = vsel %vm635_vm1, %v630_v31, %v636_v34 }
 0x1ac   : > { %v638_v37 = vpack.c.bf16 %v637_v36, %v637_v36 }
 0x1ae   : > { %780 = vmatmul.mubr.bf16.vlgmr.msra.gmra.mrb[0].mxu1 %v638_v37 }
 0x1af   : > { %1408 = vmatprep.mubr.msk.bf16.mxu1 %vm1854_vm0, %v1853_v0  ;;  %1393 = vmatpush3.bf16.msra.mxu1 %v1556_v44 }
 0x1b0   : > { %1394 = vmatprep.subr.bf16.mxu1 %v1853_v0 }
 0x1b3   : > { %1395 = vmatpush3.bf16.msra.mxu1 %v1557_v45 }
 0x1b4   : > { %1396 = vmatprep.subr.bf16.mxu1 %v1853_v0 }
 0x1b7   : > { %1397 = vmatpush3.bf16.msra.mxu1 %v1558_v46 }
 0x1b8   : > { %1398 = vmatprep.subr.bf16.mxu1 %v1853_v0 }
 0x1bb   : > { %1399 = vmatpush3.bf16.msra.mxu1 %v1559_v47 }
 0x1bc   : > { %1400 = vmatprep.subr.bf16.mxu1 %v1853_v0 }
 0x1bf   : > { %1401 = vmatpush3.bf16.msra.mxu1 %v1560_v48 }
 0x1c0   : > { %1402 = vmatprep.subr.bf16.mxu1 %v1853_v0 }
 0x1c3   : > { %1403 = vmatpush3.bf16.msra.mxu1 %v1561_v49 }
 0x1c4   : > { %1404 = vmatprep.subr.bf16.mxu1 %v1853_v0 }
 0x1c7   : > { %1405 = vmatpush3.bf16.msra.mxu1 %v1562_v7 }
 0x1c8   : > { %1406 = vmatprep.subr.bf16.mxu1 %v1853_v0 }
 0x1cb   : > { %1407 = vmatpush3.bf16.msra.mxu1 %v1563_v8 }
 0x281   : > { %v781_v57 = vpop.f32.mrb[0].mxu1 }
 0x282   : > { %v782_v58 = vadd.f32 %v781_v57, %v660_v55  ;;  %v783_v59 = vpop.f32.mrb[1].mxu1 }
 0x283   : > { %v784_v60 = vadd.f32 %v783_v59, %v664_v56  ;;  %v785_v61 = vpop.f32.mrb[2].mxu1 }
 0x284   : > { %1022 = vst [vmem:[%s510_s11] sm:$0xff] %v782_v58  ;;  %v786_v62 = vpop.f32.mrb[3].mxu1 }
 0x285   : > { %v789_v63 = vmul.f32 0.5, %v784_v60  ;;  %1023 = vst [vmem:[%s517_s29] sm:$0xff] %v784_v60 }
 0x287   : > { %v790_v1 = vmul.f32 1.442695, %v789_v63 }
 0x289   : > { %1564 = vpow2.f32 %v790_v1 }
 0x293   : > { %v1565_v3 = vpop.eup %1564 }
 0x294   : > { %v792_v4 = vmul.f32 %v1565_v3, %v788_v2 }
 0x296   : > { %v793_v5 = vadd.f32 %v792_v4, %v782_v58 }
 0x298   : > { %v794_v6 = vpack.c.bf16 %v793_v5, %v793_v5 }
 0x29a   : > { %1389 = vmatmul.mubr.bf16.vlgmr.msra.gmra.mrb[4].mxu0 %v794_v6 }
 0x36d   : > { %v900_v10 = vpop.f32.mrb[4].mxu0 }
 0x36e   : > { %v901_v11 = vadd.f32 %v1299_v9, %v900_v10  ;;  %v1390_v12 = vpop.f32.mrb[5].mxu0 }
 0x36f   : > { %v903_v13 = vpop.f32.mrb[6].mxu0 }
 0x370   : > { %vm906_vm2 = vcmp.gt.f32.partialorder %v901_v11, 0.0  ;;  %v907_v14 = vmul.f32 0.01, %v901_v11  ;;  %v1391_v15 = vpop.f32.mrb[7].mxu0 }
 0x372   : > { %v908_v16 = vsel %vm906_vm2, %v901_v11, %v907_v14 }
 0x373   : > { %v909_v17 = vpack.c.bf16 %v908_v16, %v908_v16 }
 0x375   : > { %1409 = vmatmul.mubr.bf16.vlgmr.msra.gmra.mrb[4].mxu1 %v909_v17 }
 0x376   : > { %1721 = shalt.err (!%p1718_p2)
}
 0x377   : > { %s1722_s11 = scalar_lea.hbm %s2231_s15, 128  ;;  %s1726_s17 = scalar_lea.hbm %s2381_s30, 256 }
 0x378   : > { %p1723_p8 = scmp.ne.s32.totalorder %s2231_s15, %s1722_s11  ;;  %p1727_p11 = scmp.lt.u32.totalorder %s2231_s15, %s2381_s30 }
 0x379   : > { %p1728_p1 = scmp.lt.u32.totalorder %s1726_s17, %s1722_s11  ;;  %p1730_p5 = scmp.lt.u32.totalorder %s1722_s11, %s2231_s15 }
 0x37a   : > { %p1724_p4 = pnand %p1723_p8, %p2382_p7 }
 0x37b   : > { %p1729_p6 = por %p1728_p1, %p1727_p11 }
 0x37c   : > { %p1725_p10 = pneg %p1724_p4 }
 0x37d   : > { %p1731_p9 = por %p1730_p5, %p1729_p6 }
 0x37f   : > { %p1732_p12 = pnand %p1731_p9, %p1725_p10 }
 0x381   : > { %1735 = shalt.err (!%p1732_p12)
}
 0x382   : > { %1431 = dma.vmem_to_hbm [thread:$0]  (%p2382_p7), %s1062_s26, 128, %s2231_s15, %s2239_s8  }
 0x383   : > { %s2383_s27 = sld [smem:[#allocation27_spill]]  ;;  %s1736_s13 = scalar_lea.vmem %s1075_s20, 128 }
 0x384   : > { %p1737_p3 = scmp.ne.s32.totalorder %s1075_s20, %s1736_s13  ;;  %s1857_s11 = smov [#allocation14]  }
 0x385   : > { %s1740_s17 = sshll.u32 %s1857_s11, 4  ;;  %s1741_s17 = int_to_ptr.vmem [resolvable:$false] %s1740_s17 }
 0x386   : > { %p1738_p13 = pnand %p1737_p3, %p2382_p7  ;;  %s1742_s18 = scalar_lea.vmem %s1741_s17, 256 }
 0x387   : > { %p1743_p2 = scmp.lt.s32.totalorder %s1075_s20, %s1741_s17  ;;  %p1744_p8 = scmp.lt.s32.totalorder %s1742_s18, %s1736_s13 }
 0x388   : > { %p1739_p0 = pneg %p1738_p13 }
 0x389   : > { %s1072_s29 = scalar_lea.hbm %s2383_s27, %s2225_s19  ;;  %p1745_p4 = por %p1744_p8, %p1743_p2 }
 0x38b   : > { %p1746_p10 = pnand %p1745_p4, %p1739_p0 }
 0x38d   : > { %1749 = shalt.err (!%p1746_p10)
}
 0x38e   : > { %s1750_s15 = scalar_lea.hbm %s1072_s29, 128  ;;  %s1754_s2 = scalar_lea.hbm %s2383_s27, 256 }
 0x38f   : > { %p1751_p11 = scmp.ne.s32.totalorder %s1072_s29, %s1750_s15  ;;  %p1755_p5 = scmp.lt.u32.totalorder %s1072_s29, %s2383_s27 }
 0x390   : > { %p1756_p9 = scmp.lt.u32.totalorder %s1754_s2, %s1750_s15  ;;  %p1758_p3 = scmp.lt.u32.totalorder %s1750_s15, %s1072_s29 }
 0x391   : > { %p1752_p1 = pnand %p1751_p11, %p2382_p7 }
 0x392   : > { %p1757_p12 = por %p1756_p9, %p1755_p5 }
 0x393   : > { %p1753_p6 = pneg %p1752_p1 }
 0x394   : > { %p1759_p13 = por %p1758_p3, %p1757_p12 }
 0x396   : > { %p1760_p0 = pnand %p1759_p13, %p1753_p6 }
 0x398   : > { %1763 = shalt.err (!%p1760_p0)
}
 0x399   : > { %1432 = dma.vmem_to_hbm [thread:$0]  (%p2382_p7), %s1075_s20, 128, %s1072_s29, %s2239_s8  }
 0x39a   : > { %s2384_s17 = sld [smem:[#allocation24_spill]]  ;;  %s503_s3 = scalar_lea.vmem [#allocation11], %s2206_s10 }
 0x39b   : > { %s1048_s18 = sshll.u32 %s503_s3, 4  ;;  %s2385_s0 = sld [smem:[#allocation25_spill]]  ;;  %s2287_s18 = int_to_ptr.vmem [resolvable:$true] %s1048_s18 }
 0x39c   : > { %s1025_s20 = scalar_lea.sflag [#allocation4], %s2151_s1  ;;  %s1764_s8 = scalar_lea.vmem %s2287_s18, 128 }
 0x39d   : > { %p1765_p2 = scmp.ne.s32.totalorder %s2287_s18, %s1764_s8  ;;  %s1858_s10 = smov [#allocation11]  }
 0x39e   : > { %s1768_s29 = sshll.u32 %s1858_s10, 4  ;;  %s1769_s29 = int_to_ptr.vmem [resolvable:$false] %s1768_s29 }
 0x39f   : > { %p1766_p8 = pnand %p1765_p2, %p2382_p7  ;;  %s1770_s28 = scalar_lea.vmem %s1769_s29, 256 }
 0x3a0   : > { %v1308_v0 = vld [vmem:[%s2384_s17] ss:$0 sm:$0xff]  ;;  %p1771_p10 = scmp.lt.s32.totalorder %s2287_s18, %s1769_s29  ;;  %p1772_p11 = scmp.lt.s32.totalorder %s1770_s28, %s1764_s8 }
 0x3a1   : > { %s2285_s2 = scalar_lea.hbm %s2385_s0, %s2225_s19  ;;  %p1767_p4 = pneg %p1766_p8 }
 0x3a2   : > { %p1773_p1 = por %p1772_p11, %p1771_p10 }
 0x3a4   : > { %p1774_p6 = pnand %p1773_p1, %p1767_p4 }
 0x448   : > { %v1015_v18 = vpop.f32.mrb[4].mxu1 }
 0x449   : > { %v1016_v19 = vadd.f32 %v1308_v0, %v1015_v18  ;;  %v1410_v20 = vpop.f32.mrb[5].mxu1 }
 0x44a   : > { %v1018_v21 = vpop.f32.mrb[6].mxu1 }
 0x44b   : > { %1021 = vst [vmem:[%s503_s3] sm:$0xff] %v1016_v19  ;;  %v1411_v22 = vpop.f32.mrb[7].mxu1 }
 0x44c   : > { %1777 = shalt.err (!%p1774_p6)
}
 0x44d   : > { %s1778_s1 = scalar_lea.hbm %s2285_s2, 128  ;;  %s1782_s11 = scalar_lea.hbm %s2385_s0, 256 }
 0x44e   : > { %p1779_p5 = scmp.ne.s32.totalorder %s2285_s2, %s1778_s1  ;;  %p1783_p3 = scmp.lt.u32.totalorder %s2285_s2, %s2385_s0 }
 0x44f   : > { %p1784_p13 = scmp.lt.u32.totalorder %s1782_s11, %s1778_s1  ;;  %p1786_p2 = scmp.lt.u32.totalorder %s1778_s1, %s2285_s2 }
 0x450   : > { %p1780_p9 = pnand %p1779_p5, %p2382_p7 }
 0x451   : > { %p1785_p0 = por %p1784_p13, %p1783_p3 }
 0x452   : > { %p1781_p12 = pneg %p1780_p9 }
 0x453   : > { %p1787_p8 = por %p1786_p2, %p1785_p0 }
 0x455   : > { %p1788_p4 = pnand %p1787_p8, %p1781_p12 }
 0x457   : > { %1791 = shalt.err (!%p1788_p4)
}
 0x458   : > { %1430 = dma.vmem_to_hbm [thread:$0]  (%p2382_p7), %s2287_s18, 128, %s2285_s2, %s1025_s20  }
 0x459 PF: > { %s1086_s15 = sand.u32 1, %s1830_s21   ;;  %p2386_p10 = scmp.ne.s32.totalorder %s2372_s16, 0 }
 0x45a   : > { %p2387_p11 = scmp.ge.s32.totalorder %s1842_s24, 2  ;;  %s1087_s26 = scalar_lea.sflag [#allocation4], %s1086_s15 }
 0x45c   : > { %p1454_p1 = pnand %p2387_p11, %p2386_p10 }
 0x45e   : > { %1821 = dma.done.wait (!%p1454_p1), %s1087_s26, 128  }
 0x45f   : > { %1823 = vsyncadd (!%p1454_p1), %s1087_s26, 4294967168  ;;  %s2388_s8 = sadd.s32 4294967294, %s1842_s24  }
 0x460   : > { %s1095_s10 = sand.u32 1, %s2388_s8  }
 0x461   : > { %s1096_s29 = scalar_lea.sflag [#allocation13], %s1095_s10 }
 0x462   : > { %1825 = dma.done.wait (!%p1454_p1), %s1096_s29, 256  }
 0x463   : > { %1827 = vsyncadd (!%p1454_p1), %s1096_s29, 4294967040  ;;  %p31_p7 = scmp.ge.s32.totalorder %s2073_s25, 4   ;;  %s2389_s21 = smov %s1834_s22 }
 0x464   : > { %s2390_s22 = smov %s1838_s23  ;;  %s2391_s23 = smov %s2084_s12 }
 0x465   : > { %s2392_s24 = smov %s2073_s25  ;;  %33 = sbr.rel (!%p31_p7) target bundleno = 18 (0x12), region = 156 }
 0x46c   :  { %1110 = vsyncpa [#allocation3], 1 }
 0x46d   :  { %1112 = vsyncpa [#allocation3 + $0x1], 1 }
 0x46e   :  { %1113 = vsyncpa [#allocation6], 1 }
 0x46f   :  { %1114 = vsyncpa [#allocation9], 1 }
 0x470   :  { %1115 = vsyncpa [#allocation4], 1 }
 0x471   :  { %1117 = vsyncpa [#allocation4 + $0x1], 1 }
 0x472   :  { %1118 = vsyncpa [#allocation13], 1 }
 0x473   :  { %1120 = vsyncpa [#allocation13 + $0x1], 1 }

// kernel: tpu_custom_call.1
= control target key start
LH: loop header
LB: loop body
LE: loop exit
PB: predicated region body
PF: predicated region fallthrough
CT: control target
= control target key end

     0   :  { %s2331_s0 = inlined_call_operand.hbm [shape: bf16[16,128], index: 0, kind: input, shape index: {}]   ;;  %s2332_s1 = inlined_call_operand.hbm [shape: bf16[128,128], index: 1, kind: input, shape index: {}]   ;;  %s2333_s2 = inlined_call_operand.vmem [shape: f32[1,128], index: 2, kind: input, shape index: {}]   ;;  %s2334_s3 = inlined_call_operand.hbm [shape: bf16[128,256], index: 3, kind: input, shape index: {}]   ;;  %s2335_s4 = inlined_call_operand.vmem [shape: f32[1,256], index: 4, kind: input, shape index: {}]   ;;  %s2336_s5 = inlined_call_operand.hbm [shape: bf16[128,128], index: 5, kind: input, shape index: {}]   ;;  %s2337_s6 = inlined_call_operand.vmem [shape: f32[1,128], index: 6, kind: input, shape index: {}]   ;;  %s2338_s7 = inlined_call_operand.hbm [shape: bf16[128,128], index: 7, kind: input, shape index: {}]   ;;  %s2339_s8 = inlined_call_operand.vmem [shape: f32[1,128], index: 8, kind: input, shape index: {}]   ;;  %s2340_s9 = inlined_call_operand.vmem [shape: f32[16,128], index: 9, kind: input, shape index: {}]   ;;  %s2341_s10 = inlined_call_operand.hbm [shape: f32[16,128], index: 10, kind: output, shape index: {0}]   ;;  %s2342_s11 = inlined_call_operand.hbm [shape: f32[16,128], index: 11, kind: output, shape index: {1}]   ;;  %s2343_s12 = inlined_call_operand.hbm [shape: f32[16,128], index: 12, kind: output, shape index: {2}]  }
   0x1   :  { %2353 = sst [smem:[#allocation20_spill]] %s2331_s0 }
   0x2   :  { %2354 = sst [smem:[#allocation21_spill]] %s2332_s1 }
   0x3   :  { %2355 = sst [smem:[#allocation22_spill]] %s2333_s2 }
   0x4   :  { %2356 = sst [smem:[#allocation23_spill]] %s2334_s3 }
   0x5   :  { %2357 = sst [smem:[#allocation24_spill]] %s2339_s8 }
   0x6   :  { %2358 = sst [smem:[#allocation25_spill]] %s2341_s10 }
   0x7   :  { %2359 = sst [smem:[#allocation26_spill]] %s2342_s11 }
   0x8   :  { %2360 = sst [smem:[#allocation27_spill]] %s2343_s12 }
   0x9   :  { %18 = vsyncpa [#allocation3], 0 }
   0xa   :  { %20 = vsyncpa [#allocation3 + $0x1], 0 }
   0xb   :  { %21 = vsyncpa [#allocation6], 0 }
   0xc   :  { %22 = vsyncpa [#allocation9], 0 }
   0xd   :  { %23 = vsyncpa [#allocation4], 0 }
   0xe   :  { %25 = vsyncpa [#allocation4 + $0x1], 0 }
   0xf   :  { %26 = vsyncpa [#allocation13], 0 }
  0x10   :  { %28 = vsyncpa [#allocation13 + $0x1], 0  ;;  %s1924_s21 = smov 0   ;;  %s1926_s22 = smov 0  }
  0x11   :  { %s1928_s23 = smov 0   ;;  %s1930_s24 = smov 0  }
  0x12 LB: > { %s1844_s25 = smov [#allocation5]   ;;  %s1945_s27 = sadd.s32 4294967295, %s1842_s24   ;;  %s1842_s24 = sphi %s1930_s24, %s2392_s24   ;;  %s1838_s23 = sphi %s1928_s23, %s2391_s23   ;;  %s1834_s22 = sphi %s1926_s22, %s2390_s22   ;;  %s1830_s21 = sphi %s1924_s21, %s2389_s21  }
  0x13   : > { %s349_s26 = sshll.u32 %s1844_s25, 4  ;;  %p1256_p0 = scmp.ge.s32.totalorder %s1842_s24, 1  ;;  %s1950_s26 = int_to_ptr.vmem [resolvable:$true] %s349_s26 }
  0x14   : > { %p2349_p1 = scmp.eq.s32.totalorder %s1945_s27, 0  ;;  %p337_p2 = scmp.lt.s32.totalorder %s1842_s24, 3 }
  0x15   : > { %s1845_s29 = smov [#allocation8]   ;;  %s1846_s14 = smov [#allocation7]  }
  0x16   : > { %p1952_p3 = pnand %p1256_p0, %p337_p2  ;;  %s381_s30 = sshll.u32 %s1845_s29, 4  ;;  %s1965_s30 = int_to_ptr.vmem [resolvable:$true] %s381_s30 }
  0x17   : > { %s365_s15 = sshll.u32 %s1846_s14, 4  ;;  %s2363_s1 = sld [smem:[#allocation21_spill]]  ;;  %s1967_s15 = int_to_ptr.vmem [resolvable:$true] %s365_s15 }
  0x18   : > { %s2361_s28 = scalar_select %p1952_p3, 1, 0 }
  0x19   : > { %p1436_p5 = pneg %p1952_p3 }
  0x1b   : > { %p1961_p6 = pnand %p1436_p5, %p2349_p1 }
  0x1d   : > { %s1566_s18 = scalar_lea.hbm %s2363_s1, 1024  ;;  %p1977_p8 = pneg %p1961_p6 }
  0x1e   : > { %p1567_p7 = scmp.ne.s32.totalorder %s2363_s1, %s1566_s18  ;;  %p1573_p11 = scmp.lt.u32.totalorder %s1566_s18, %s2363_s1 }
  0x20   : > { %p1569_p9 = pnand %p1977_p8, %p1567_p7 }
  0x22   : > { %p1570_p10 = pneg %p1569_p9 }
  0x24   : > { %p1575_p12 = pnand %p1573_p11, %p1570_p10 }
  0x26   : > { %1578 = shalt.err (!%p1575_p12)
}
  0x27   : > { %s1579_s16 = scalar_lea.vmem %s1950_s26, 1024  ;;  %p1587_p5 = scmp.lt.s32.totalorder %s1950_s26, %s1950_s26 }
  0x28   : > { %p1580_p13 = scmp.ne.s32.totalorder %s1950_s26, %s1579_s16  ;;  %p1588_p4 = scmp.lt.s32.totalorder %s1579_s16, %s1579_s16 }
  0x2a   : > { %p1582_p0 = pnand %p1580_p13, %p1977_p8  ;;  %p1589_p7 = por %p1588_p4, %p1587_p5 }
  0x2c   : > { %p1583_p2 = pneg %p1582_p0 }
  0x2e   : > { %p1590_p9 = pnand %p1589_p7, %p1583_p2 }
  0x30   : > { %1593 = shalt.err (!%p1590_p9)
}
  0x31   : > { %s2347_s17 = smov 64   ;;  %s2348_s18 = smov 4  }
  0x32   : > { %1439 = dma.hbm_to_vmem [thread:$0]  (!%p1961_p6), %s2363_s1, 1024, %s1950_s26, [#allocation6], %s2347_s17, %s2347_s17, %s2348_s18  }
  0x33   : > { %s1594_s16 = scalar_lea.hbm %s2336_s5, 1024 }
  0x34   : > { %p1595_p4 = scmp.ne.s32.totalorder %s2336_s5, %s1594_s16  ;;  %p1601_p12 = scmp.lt.u32.totalorder %s1594_s16, %s2336_s5 }
  0x36   : > { %p1597_p10 = pnand %p1595_p4, %p1977_p8 }
  0x38   : > { %p1598_p11 = pneg %p1597_p10 }
  0x3a   : > { %p1603_p13 = pnand %p1601_p12, %p1598_p11 }
  0x3c   : > { %1606 = shalt.err (!%p1603_p13)
}
  0x3d   : > { %s1607_s26 = scalar_lea.vmem %s1965_s30, 1024  ;;  %p1615_p7 = scmp.lt.s32.totalorder %s1965_s30, %s1965_s30 }
  0x3e   : > { %p1608_p0 = scmp.ne.s32.totalorder %s1965_s30, %s1607_s26  ;;  %p1616_p9 = scmp.lt.s32.totalorder %s1607_s26, %s1607_s26 }
  0x40   : > { %p1610_p2 = pnand %p1608_p0, %p1977_p8  ;;  %p1617_p4 = por %p1616_p9, %p1615_p7 }
  0x42   : > { %p1611_p5 = pneg %p1610_p2 }
  0x44   : > { %p1618_p10 = pnand %p1617_p4, %p1611_p5 }
  0x46   : > { %1621 = shalt.err (!%p1618_p10)
}
  0x47   : > { %1445 = dma.hbm_to_vmem [thread:$0]  (!%p1961_p6), %s2336_s5, 1024, %s1965_s30, [#allocation9], %s2347_s17, %s2347_s17, %s2348_s18  }
  0x48   : > { %s2365_s3 = sld [smem:[#allocation23_spill]] }
  0x4e   : > { %s1622_s19 = scalar_lea.hbm %s2365_s3, 2048 }
  0x4f   : > { %p1623_p11 = scmp.ne.s32.totalorder %s2365_s3, %s1622_s19  ;;  %p1629_p0 = scmp.lt.u32.totalorder %s1622_s19, %s2365_s3 }
  0x51   : > { %p1625_p12 = pnand %p1623_p11, %p1977_p8 }
  0x53   : > { %p1626_p13 = pneg %p1625_p12 }
  0x55   : > { %p1631_p2 = pnand %p1629_p0, %p1626_p13 }
  0x57   : > { %1634 = shalt.err (!%p1631_p2)
}
  0x58   : > { %s1635_s30 = scalar_lea.vmem %s1967_s15, 2048  ;;  %p1643_p4 = scmp.lt.s32.totalorder %s1967_s15, %s1967_s15 }
  0x59   : > { %p1636_p5 = scmp.ne.s32.totalorder %s1967_s15, %s1635_s30  ;;  %p1644_p10 = scmp.lt.s32.totalorder %s1635_s30, %s1635_s30 }
  0x5b   : > { %p1638_p7 = pnand %p1636_p5, %p1977_p8  ;;  %p1645_p11 = por %p1644_p10, %p1643_p4 }
  0x5d   : > { %p1639_p9 = pneg %p1638_p7 }
  0x5f   : > { %p1646_p12 = pnand %p1645_p11, %p1639_p9 }
  0x61   : > { %1649 = shalt.err (!%p1646_p12)
}
  0x62   : > { %s1849_s26 = smov 128   ;;  %s1850_s8 = smov 8  }
  0x63   : > { %1442 = dma.hbm_to_vmem [thread:$0]  (!%p1961_p6), %s2365_s3, 2048, %s1967_s15, [#allocation6], %s1849_s26, %s1849_s26, %s1850_s8  }
  0x64   : > { %s1851_s12 = smov [#allocation10]   ;;  %s1650_s14 = scalar_lea.hbm %s2338_s7, 1024 }
  0x65   : > { %s397_s19 = sshll.u32 %s1851_s12, 4  ;;  %p1651_p13 = scmp.ne.s32.totalorder %s2338_s7, %s1650_s14  ;;  %s398_s19 = int_to_ptr.vmem [resolvable:$true] %s397_s19 }
  0x66   : > { %p1657_p5 = scmp.lt.u32.totalorder %s1650_s14, %s2338_s7 }
  0x67   : > { %p1653_p0 = pnand %p1651_p13, %p1977_p8 }
  0x69   : > { %p1654_p2 = pneg %p1653_p0 }
  0x6b   : > { %p1659_p7 = pnand %p1657_p5, %p1654_p2 }
  0x6d   : > { %1662 = shalt.err (!%p1659_p7)
}
  0x6e   : > { %s1663_s15 = scalar_lea.vmem %s398_s19, 1024  ;;  %p1671_p11 = scmp.lt.s32.totalorder %s398_s19, %s398_s19 }
  0x6f   : > { %p1664_p9 = scmp.ne.s32.totalorder %s398_s19, %s1663_s15  ;;  %p1672_p12 = scmp.lt.s32.totalorder %s1663_s15, %s1663_s15 }
  0x71   : > { %p1666_p4 = pnand %p1664_p9, %p1977_p8  ;;  %p1673_p1 = por %p1672_p12, %p1671_p11 }
  0x73   : > { %p1667_p10 = pneg %p1666_p4 }
  0x75   : > { %p1674_p3 = pnand %p1673_p1, %p1667_p10 }
  0x77   : > { %1677 = shalt.err (!%p1674_p3)
}
  0x78   : > { %s2366_s26 = smov 4   ;;  %s2367_s8 = smov 64  }
  0x79   : > { %1448 = dma.hbm_to_vmem [thread:$0]  (!%p1961_p6), %s2338_s7, 1024, %s398_s19, [#allocation9], %s2367_s8, %s2367_s8, %s2366_s26  }
  0x7a   : > { %s2351_s13 = sadd.s32 4294967294, %s1842_s24   ;;  %s2073_s25 = sadd.s32 1, %s1842_s24  }
  0x7b   : > { %s38_s10 = ssub.s32 %s1842_s24, %s2073_s25  ;;  %s41_s11 = sadd.s32 1, %s1838_s23 }
  0x7c   : > { %p39_p1 = scmp.eq.s32.totalorder %s38_s10, 0  ;;  %p48_p3 = scmp.ne.s32.totalorder %s1838_s23, %s1834_s22 }
  0x7d   : > { %p49_p8 = scmp.eq.s32.totalorder %s1842_s24, 0  ;;  %p54_p13 = scmp.ne.s32.totalorder %s1834_s22, %s1830_s21 }
  0x7e   : > { %s2084_s12 = scalar_select %p39_p1, %s1838_s23, %s41_s11  }
  0x7f   : > { %p2086_p0 = por %p49_p8, %p48_p3  ;;  %p2369_p2 = scmp.eq.s32.totalorder %s1945_s27, 0 }
  0x80   : > { %p272_p5 = scmp.eq.s32.totalorder %s1945_s27, 1  ;;  %p278_p7 = scmp.eq.s32.totalorder %s2351_s13, 1 }
  0x81   : > { %p2092_p6 = por %p2369_p2, %p54_p13  ;;  %p1467_p9 = scmp.lt.s32.totalorder %s1842_s24, 2 }
  0x82   : > { %s414_s29 = sand.u32 1, %s1838_s23   ;;  %p2101_p4 = por %p272_p5, %p48_p3 }
  0x83   : > { %p2105_p10 = por %p278_p7, %p54_p13  ;;  %s1262_s30 = sshll.u32 %s414_s29, 2 }
  0x84   : > { %s2371_s14 = scalar_select %p2101_p4, 1, 0 }
  0x85   : > { %s2372_s16 = scalar_select %p2105_p10, 1, 0 }
  0x86   : > { %s1263_s15 = sshll.u32 %s1842_s24, 6  ;;  %s2373_s0 = sld [smem:[#allocation20_spill]] }
  0x87   : > { %s418_s18 = scalar_lea.vmem [#allocation2], %s1262_s30  ;;  %p2119_p11 = pnand %p1467_p9, %p2086_p0 }
  0x88   : > { %s425_s10 = sshll.u32 %s418_s18, 4  ;;  %s415_s13 = scalar_lea.sflag [#allocation3], %s414_s29  ;;  %s2115_s10 = int_to_ptr.vmem [resolvable:$true] %s425_s10 }
  0x89   : > { %p1680_p1 = pneg %p2119_p11 }
  0x8c   : > { %s2113_s17 = scalar_lea.hbm %s2373_s0, %s1263_s15  ;;  %s1683_s26 = scalar_lea.hbm %s2373_s0, 128 }
  0x8d   : > { %s1678_s1 = scalar_lea.hbm %s2113_s17, 64  ;;  %p1684_p13 = scmp.lt.u32.totalorder %s2113_s17, %s2373_s0 }
  0x8e   : > { %p1679_p12 = scmp.ne.s32.totalorder %s2113_s17, %s1678_s1  ;;  %p1685_p0 = scmp.lt.u32.totalorder %s1683_s26, %s1678_s1 }
  0x8f   : > { %p1687_p5 = scmp.lt.u32.totalorder %s1678_s1, %s2113_s17 }
  0x90   : > { %p1681_p3 = pnand %p1680_p1, %p1679_p12  ;;  %p1686_p2 = por %p1685_p0, %p1684_p13 }
  0x92   : > { %p1682_p8 = pneg %p1681_p3  ;;  %p1688_p7 = por %p1687_p5, %p1686_p2 }
  0x94   : > { %p1689_p9 = pnand %p1688_p7, %p1682_p8 }
  0x96   : > { %1692 = shalt.err (!%p1689_p9)
}
  0x97   : > { %s1693_s29 = scalar_lea.vmem %s2115_s10, 64  ;;  %s1852_s18 = smov [#allocation2]  }
  0x98   : > { %p1694_p12 = scmp.ne.s32.totalorder %s2115_s10, %s1693_s29  ;;  %s1698_s30 = sshll.u32 %s1852_s18, 4  ;;  %s1699_s30 = int_to_ptr.vmem [resolvable:$false] %s1698_s30 }
  0x99   : > { %s1700_s15 = scalar_lea.vmem %s1699_s30, 128  ;;  %p1701_p4 = scmp.lt.s32.totalorder %s2115_s10, %s1699_s30 }
  0x9a   : > { %p1696_p3 = pnand %p1694_p12, %p1680_p1  ;;  %p1702_p13 = scmp.lt.s32.totalorder %s1700_s15, %s1693_s29 }
  0x9c   : > { %p1697_p10 = pneg %p1696_p3  ;;  %p1703_p0 = por %p1702_p13, %p1701_p4 }
  0x9e   : > { %p1704_p2 = pnand %p1703_p0, %p1697_p10 }
  0xa0   : > { %1707 = shalt.err (!%p1704_p2)
}
  0xa1   : > { %1452 = dma.hbm_to_vmem [thread:$0]  (!%p2119_p11), %s2113_s17, 64, %s2115_s10, %s415_s13  }
  0xa2   : > { %p2375_p8 = scmp.ne.s32.totalorder %s2361_s28, 0 }
  0xa3   : > { %s2151_s1 = sand.u32 (!%p2375_p8), 1, %s1834_s22  }
  0xa4   : > { %441 = sbr.rel (%p2375_p8) target bundleno = 1113 (0x459), region = 60  ;;  %s1265_s26 = sshll.u32 (!%p2375_p8), %s2151_s1, 2 }
  0xa5   : > { %s444_s20 = scalar_lea.sflag (!%p2375_p8), [#allocation3], %s2151_s1  ;;  %s2155_s8 = scalar_lea.vmem (!%p2375_p8), [#allocation2], %s1265_s26 }
  0xab   : > { %1809 = dma.done.wait (%p2092_p6), %s444_s20, 64  }
  0xac   : > { %1811 = vsyncadd (%p2092_p6), %s444_s20, 4294967232  ;;  %p2376_p4 = scmp.eq.s32.totalorder %s1945_s27, 0 }
  0xae   : > { %1813 = dma.done.wait (%p2376_p4), [#allocation6], 3072   ;;  %p2377_p10 = pmov %p2376_p4 }
  0xaf   : > { %p2378_p11 = pmov %p2376_p4 }
  0xb0   : > { %1815 = vsyncadd (%p2377_p10), [#allocation6], 4294964224 }
  0xb1   : > { %1817 = dma.done.wait (%p2378_p11), [#allocation9], 2048   ;;  %p2379_p1 = pmov %p2376_p4 }
  0xb2   : > { %v1853_v0 = vmov 0.0   ;;  %vm1854_vm0 = vmmov 0   ;;  %v1516_v1 = vld [vmem:[#allocation5] sm:$0xff]   ;;  %v1517_v2 = vld [vmem:[#allocation5 + $0x8] sm:$0xff]   ;;  %v1518_v3 = vld [vmem:[#allocation5 + $0x10] sm:$0xff]   ;;  %v1855_v26 = vmov 0   ;;  %v657_v50 = vlaneseq }
  0xb3   : > { %1819 = vsyncadd (%p2379_p1), [#allocation9], 4294965248  ;;  %1352 = vmatprep.subr.bf16.mxu0 %v1853_v0  ;;  %1368 = vmatprep.mubr.msk.bf16.mxu0 %vm1854_vm0, %v1853_v0  ;;  %v1524_v4 = vld [vmem:[#allocation7 + $0x4] ss:$8 sps:$4 sm:$0xff]   ;;  %v1526_v5 = vld [vmem:[#allocation7] ss:$8 sps:$4 sm:$0xff]  }
  0xb4   : > { %1353 = vmatpush3.bf16.msra.mxu0 %v1516_v1  ;;  %v1519_v6 = vld [vmem:[#allocation5 + $0x18] sm:$0xff]   ;;  %747 = vmatprep.subr.bf16.mxu1 %v1524_v4  ;;  %v1530_v9 = vld [vmem:[#allocation7 + $0x24] ss:$8 sps:$4 sm:$0xff]   ;;  %v1532_v12 = vld [vmem:[#allocation7 + $0x20] ss:$8 sps:$4 sm:$0xff]   ;;  %s2380_s2 = sld [smem:[#allocation22_spill]] }
  0xb5   : > { %1354 = vmatprep.subr.bf16.mxu0 %v1853_v0  ;;  %v1527_v7 = vld [vmem:[#allocation7 + $0x14] ss:$8 sps:$4 sm:$0xff]   ;;  %748 = vmatpush1.bf16.msra.mxu1 %v1526_v5  ;;  %v1529_v8 = vld [vmem:[#allocation7 + $0x10] ss:$8 sps:$4 sm:$0xff]   ;;  %v1520_v10 = vld [vmem:[#allocation5 + $0x20] sm:$0xff]   ;;  %v658_v51 = vshrl.u32 %v657_v50, 7 }
  0xb6   : > { %749 = vmatprep.subr.bf16.mxu1 %v1527_v7  ;;  %v1521_v11 = vld [vmem:[#allocation5 + $0x28] sm:$0xff]   ;;  %v1533_v13 = vld [vmem:[#allocation7 + $0x34] ss:$8 sps:$4 sm:$0xff]   ;;  %v1535_v14 = vld [vmem:[#allocation7 + $0x30] ss:$8 sps:$4 sm:$0xff]   ;;  %779 = vmatprep.mubr.bf16.mxu1 %v1855_v26  ;;  %s2206_s10 = sshll.u32 %s2151_s1, 3 }
  0xb7   : > { %v1536_v15 = vld [vmem:[#allocation7 + $0x44] ss:$8 sps:$4 sm:$0xff]   ;;  %v1522_v16 = vld [vmem:[#allocation5 + $0x30] sm:$0xff]   ;;  %v1538_v17 = vld [vmem:[#allocation7 + $0x40] ss:$8 sps:$4 sm:$0xff]   ;;  %v659_v52 = vsub.s32 0, %v658_v51 }
  0xb8   : > { %1355 = vmatpush3.bf16.msra.mxu0 %v1517_v2  ;;  %v1539_v18 = vld [vmem:[#allocation7 + $0x54] ss:$8 sps:$4 sm:$0xff]   ;;  %v1541_v20 = vld [vmem:[#allocation7 + $0x50] ss:$8 sps:$4 sm:$0xff]   ;;  %v1542_v22 = vld [vmem:[#allocation7 + $0x64] ss:$8 sps:$4 sm:$0xff]  }
  0xb9   : > { %1356 = vmatprep.subr.bf16.mxu0 %v1853_v0  ;;  %750 = vmatpush1.bf16.msra.mxu1 %v1529_v8  ;;  %v1523_v19 = vld [vmem:[#allocation5 + $0x38] sm:$0xff]   ;;  %v1544_v23 = vld [vmem:[#allocation7 + $0x60] ss:$8 sps:$4 sm:$0xff]   ;;  %v1550_v38 = vld [vmem:[#allocation8 + $0x10] sm:$0xff]   ;;  %v663_v54 = vsub.s32 1, %v658_v51  ;;  %p518_p6 = scmp.lt.s32.totalorder %s1945_s27, 1 }
  0xba   : > { %751 = vmatprep.subr.bf16.mxu1 %v1530_v9  ;;  %v523_v21 = vld [vmem:[%s2155_s8] sm:$0xf]  ;;  %v1548_v27 = vld [vmem:[#allocation8] sm:$0xff]   ;;  %v1549_v28 = vld [vmem:[#allocation8 + $0x8] sm:$0xff]   ;;  %s510_s11 = scalar_lea.vmem [#allocation12], %s2206_s10  ;;  %s517_s29 = scalar_lea.vmem [#allocation14], %s2206_s10 }
  0xbb   : > { %v1545_v24 = vld [vmem:[#allocation7 + $0x74] ss:$8 sps:$4 sm:$0xff]   ;;  %v1547_v25 = vld [vmem:[#allocation7 + $0x70] ss:$8 sps:$4 sm:$0xff]   ;;  %v1274_v29 = vld [vmem:[%s2380_s2] ss:$0 sm:$0xff] }
  0xbc   : > { %1357 = vmatpush3.bf16.msra.mxu0 %v1518_v3  ;;  %v1551_v39 = vld [vmem:[#allocation8 + $0x18] sm:$0xff]   ;;  %v1552_v40 = vld [vmem:[#allocation8 + $0x20] sm:$0xff]   ;;  %v1553_v41 = vld [vmem:[#allocation8 + $0x28] sm:$0xff]   ;;  %s519_s18 = scalar_select %p518_p6, %s1945_s27, 1 }
  0xbd   : > { %1358 = vmatprep.subr.bf16.mxu0 %v1853_v0  ;;  %752 = vmatpush1.bf16.msra.mxu1 %v1532_v12  ;;  %v1554_v42 = vld [vmem:[#allocation8 + $0x30] sm:$0xff]   ;;  %v1555_v43 = vld [vmem:[#allocation8 + $0x38] sm:$0xff]   ;;  %v1556_v44 = vld [vmem:[#allocation10] sm:$0xff]   ;;  %s1029_s13 = sand.u32 1, %s1945_s27   ;;  %s2225_s19 = sshll.u32 %s1945_s27, 7 }
  0xbe   : > { %753 = vmatprep.subr.bf16.mxu1 %v1533_v13  ;;  %v1557_v45 = vld [vmem:[#allocation10 + $0x8] sm:$0xff]   ;;  %v1558_v46 = vld [vmem:[#allocation10 + $0x10] sm:$0xff]   ;;  %v1559_v47 = vld [vmem:[#allocation10 + $0x18] sm:$0xff]   ;;  %s1273_s30 = sshll.u32 %s519_s18, 3  ;;  %s1061_s26 = sshll.u32 %s510_s11, 4  ;;  %s1062_s26 = int_to_ptr.vmem [resolvable:$true] %s1061_s26 }
  0xbf   : > { %v1560_v48 = vld [vmem:[#allocation10 + $0x20] sm:$0xff]   ;;  %v1561_v49 = vld [vmem:[#allocation10 + $0x28] sm:$0xff]   ;;  %s521_s20 = scalar_lea.vmem %s2340_s9, %s1273_s30  ;;  %v1562_v7 = vld [vmem:[#allocation10 + $0x30] sm:$0xff]   ;;  %s2381_s30 = sld [smem:[#allocation26_spill]] }
  0xc0   : > { %1359 = vmatpush3.bf16.msra.mxu0 %v1519_v6  ;;  %v655_v53 = vld [vmem:[%s2335_s4] sm:$0x3]  ;;  %v1563_v8 = vld [vmem:[#allocation10 + $0x38] sm:$0xff]   ;;  %s2239_s8 = scalar_lea.sflag [#allocation13], %s1029_s13  ;;  %s1708_s28 = scalar_lea.vmem %s1062_s26, 128 }
  0xc1   : > { %1360 = vmatprep.subr.bf16.mxu0 %v1853_v0  ;;  %754 = vmatpush1.bf16.msra.mxu1 %v1535_v14  ;;  %v660_v55 = vrot.slane %v655_v53, %v659_v52  ;;  %v664_v56 = vrot.slane %v655_v53, %v663_v54  ;;  %v788_v2 = vld [vmem:[%s521_s20] sm:$0xff]  ;;  %s2237_s20 = sshll.u32 %s517_s29, 4  ;;  %p1709_p5 = scmp.ne.s32.totalorder %s1062_s26, %s1708_s28  ;;  %s1075_s20 = int_to_ptr.vmem [resolvable:$true] %s2237_s20 }
  0xc2   : > { %755 = vmatprep.subr.bf16.mxu1 %v1536_v15  ;;  %v1299_v9 = vld [vmem:[%s2337_s6] ss:$0 sm:$0xff]  ;;  %p2382_p7 = scmp.ne.s32.totalorder %s2371_s14, 0  ;;  %s1856_s27 = smov [#allocation12]  }
  0xc3   : > { %s1712_s0 = sshll.u32 %s1856_s27, 4  ;;  %s1713_s0 = int_to_ptr.vmem [resolvable:$false] %s1712_s0 }
  0xc4   : > { %1361 = vmatpush3.bf16.msra.mxu0 %v1520_v10  ;;  %p1710_p9 = pnand %p1709_p5, %p2382_p7  ;;  %s1714_s2 = scalar_lea.vmem %s1713_s0, 256 }
  0xc5   : > { %1362 = vmatprep.subr.bf16.mxu0 %v1853_v0  ;;  %756 = vmatpush1.bf16.msra.mxu1 %v1538_v17  ;;  %s2231_s15 = scalar_lea.hbm %s2381_s30, %s2225_s19  ;;  %p1715_p3 = scmp.lt.s32.totalorder %s1062_s26, %s1713_s0 }
  0xc6   : > { %757 = vmatprep.subr.bf16.mxu1 %v1539_v18  ;;  %p1711_p12 = pneg %p1710_p9  ;;  %p1716_p13 = scmp.lt.s32.totalorder %s1714_s2, %s1708_s28 }
  0xc8   : > { %1363 = vmatpush3.bf16.msra.mxu0 %v1521_v11  ;;  %p1717_p0 = por %p1716_p13, %p1715_p3 }
  0xc9   : > { %1364 = vmatprep.subr.bf16.mxu0 %v1853_v0  ;;  %758 = vmatpush1.bf16.msra.mxu1 %v1541_v20 }
  0xca   : > { %759 = vmatprep.subr.bf16.mxu1 %v1542_v22  ;;  %p1718_p2 = pnand %p1717_p0, %p1711_p12 }
  0xcc   : > { %1365 = vmatpush3.bf16.msra.mxu0 %v1522_v16 }
  0xcd   : > { %1366 = vmatprep.subr.bf16.mxu0 %v1853_v0  ;;  %760 = vmatpush1.bf16.msra.mxu1 %v1544_v23 }
  0xce   : > { %761 = vmatprep.subr.bf16.mxu1 %v1545_v24 }
  0xd0   : > { %1367 = vmatpush3.bf16.msra.mxu0 %v1523_v19 }
  0xd1   : > { %1372 = vmatprep.subr.bf16.mxu0 %v1853_v0  ;;  %762 = vmatpush1.bf16.msra.mxu1 %v1547_v25 }
  0xd2   : > { %1392 = vmatprep.subr.bf16.mxu1 %v1853_v0 }
  0xd3   : > { %1369 = vmatmul.mubr.bf16.vlgmr.msra.gmra.mrb[0].mxu0 %v523_v21 }
  0xd4   : > { %1388 = vmatprep.mubr.msk.bf16.mxu0 %vm1854_vm0, %v1853_v0  ;;  %1373 = vmatpush3.bf16.msra.mxu0 %v1548_v27 }
  0xd5   : > { %1374 = vmatprep.subr.bf16.mxu0 %v1853_v0 }
  0xd8   : > { %1375 = vmatpush3.bf16.msra.mxu0 %v1549_v28 }
  0xd9   : > { %1376 = vmatprep.subr.bf16.mxu0 %v1853_v0 }
  0xdc   : > { %1377 = vmatpush3.bf16.msra.mxu0 %v1550_v38 }
  0xdd   : > { %1378 = vmatprep.subr.bf16.mxu0 %v1853_v0 }
  0xe0   : > { %1379 = vmatpush3.bf16.msra.mxu0 %v1551_v39 }
  0xe1   : > { %1380 = vmatprep.subr.bf16.mxu0 %v1853_v0 }
  0xe4   : > { %1381 = vmatpush3.bf16.msra.mxu0 %v1552_v40 }
  0xe5   : > { %1382 = vmatprep.subr.bf16.mxu0 %v1853_v0 }
  0xe8   : > { %1383 = vmatpush3.bf16.msra.mxu0 %v1553_v41 }
  0xe9   : > { %1384 = vmatprep.subr.bf16.mxu0 %v1853_v0 }
  0xec   : > { %1385 = vmatpush3.bf16.msra.mxu0 %v1554_v42 }
  0xed   : > { %1386 = vmatprep.subr.bf16.mxu0 %v1853_v0 }
  0xf0   : > { %1387 = vmatpush3.bf16.msra.mxu0 %v1555_v43 }
 0x1a6   : > { %v629_v30 = vpop.f32.mrb[0].mxu0 }
 0x1a7   : > { %v630_v31 = vadd.f32 %v1274_v29, %v629_v30  ;;  %v1370_v32 = vpop.f32.mrb[1].mxu0 }
 0x1a8   : > { %v632_v33 = vpop.f32.mrb[2].mxu0 }
 0x1a9   : > { %vm635_vm1 = vcmp.gt.f32.partialorder %v630_v31, 0.0  ;;  %v636_v34 = vmul.f32 0.01, %v630_v31  ;;  %v1371_v35 = vpop.f32.mrb[3].mxu0 }
 0x1ab   : > { %v637_v36 = vsel %vm635_vm1, %v630_v31, %v636_v34 }
 0x1ac   : > { %v638_v37 = vpack.c.bf16 %v637_v36, %v637_v36 }
 0x1ae   : > { %780 = vmatmul.mubr.bf16.vlgmr.msra.gmra.mrb[0].mxu1 %v638_v37 }
 0x1af   : > { %1408 = vmatprep.mubr.msk.bf16.mxu1 %vm1854_vm0, %v1853_v0  ;;  %1393 = vmatpush3.bf16.msra.mxu1 %v1556_v44 }
 0x1b0   : > { %1394 = vmatprep.subr.bf16.mxu1 %v1853_v0 }
 0x1b3   : > { %1395 = vmatpush3.bf16.msra.mxu1 %v1557_v45 }
 0x1b4   : > { %1396 = vmatprep.subr.bf16.mxu1 %v1853_v0 }
 0x1b7   : > { %1397 = vmatpush3.bf16.msra.mxu1 %v1558_v46 }
 0x1b8   : > { %1398 = vmatprep.subr.bf16.mxu1 %v1853_v0 }
 0x1bb   : > { %1399 = vmatpush3.bf16.msra.mxu1 %v1559_v47 }
 0x1bc   : > { %1400 = vmatprep.subr.bf16.mxu1 %v1853_v0 }
 0x1bf   : > { %1401 = vmatpush3.bf16.msra.mxu1 %v1560_v48 }
 0x1c0   : > { %1402 = vmatprep.subr.bf16.mxu1 %v1853_v0 }
 0x1c3   : > { %1403 = vmatpush3.bf16.msra.mxu1 %v1561_v49 }
 0x1c4   : > { %1404 = vmatprep.subr.bf16.mxu1 %v1853_v0 }
 0x1c7   : > { %1405 = vmatpush3.bf16.msra.mxu1 %v1562_v7 }
 0x1c8   : > { %1406 = vmatprep.subr.bf16.mxu1 %v1853_v0 }
 0x1cb   : > { %1407 = vmatpush3.bf16.msra.mxu1 %v1563_v8 }
 0x281   : > { %v781_v57 = vpop.f32.mrb[0].mxu1 }
 0x282   : > { %v782_v58 = vadd.f32 %v781_v57, %v660_v55  ;;  %v783_v59 = vpop.f32.mrb[1].mxu1 }
 0x283   : > { %v784_v60 = vadd.f32 %v783_v59, %v664_v56  ;;  %v785_v61 = vpop.f32.mrb[2].mxu1 }
 0x284   : > { %1022 = vst [vmem:[%s510_s11] sm:$0xff] %v782_v58  ;;  %v786_v62 = vpop.f32.mrb[3].mxu1 }
 0x285   : > { %v789_v63 = vmul.f32 0.5, %v784_v60  ;;  %1023 = vst [vmem:[%s517_s29] sm:$0xff] %v784_v60 }
 0x287   : > { %v790_v1 = vmul.f32 1.442695, %v789_v63 }
 0x289   : > { %1564 = vpow2.f32 %v790_v1 }
 0x293   : > { %v1565_v3 = vpop.eup %1564 }
 0x294   : > { %v792_v4 = vmul.f32 %v1565_v3, %v788_v2 }
 0x296   : > { %v793_v5 = vadd.f32 %v792_v4, %v782_v58 }
 0x298   : > { %v794_v6 = vpack.c.bf16 %v793_v5, %v793_v5 }
 0x29a   : > { %1389 = vmatmul.mubr.bf16.vlgmr.msra.gmra.mrb[4].mxu0 %v794_v6 }
 0x36d   : > { %v900_v10 = vpop.f32.mrb[4].mxu0 }
 0x36e   : > { %v901_v11 = vadd.f32 %v1299_v9, %v900_v10  ;;  %v1390_v12 = vpop.f32.mrb[5].mxu0 }
 0x36f   : > { %v903_v13 = vpop.f32.mrb[6].mxu0 }
 0x370   : > { %vm906_vm2 = vcmp.gt.f32.partialorder %v901_v11, 0.0  ;;  %v907_v14 = vmul.f32 0.01, %v901_v11  ;;  %v1391_v15 = vpop.f32.mrb[7].mxu0 }
 0x372   : > { %v908_v16 = vsel %vm906_vm2, %v901_v11, %v907_v14 }
 0x373   : > { %v909_v17 = vpack.c.bf16 %v908_v16, %v908_v16 }
 0x375   : > { %1409 = vmatmul.mubr.bf16.vlgmr.msra.gmra.mrb[4].mxu1 %v909_v17 }
 0x376   : > { %1721 = shalt.err (!%p1718_p2)
}
 0x377   : > { %s1722_s11 = scalar_lea.hbm %s2231_s15, 128  ;;  %s1726_s17 = scalar_lea.hbm %s2381_s30, 256 }
 0x378   : > { %p1723_p8 = scmp.ne.s32.totalorder %s2231_s15, %s1722_s11  ;;  %p1727_p11 = scmp.lt.u32.totalorder %s2231_s15, %s2381_s30 }
 0x379   : > { %p1728_p1 = scmp.lt.u32.totalorder %s1726_s17, %s1722_s11  ;;  %p1730_p5 = scmp.lt.u32.totalorder %s1722_s11, %s2231_s15 }
 0x37a   : > { %p1724_p4 = pnand %p1723_p8, %p2382_p7 }
 0x37b   : > { %p1729_p6 = por %p1728_p1, %p1727_p11 }
 0x37c   : > { %p1725_p10 = pneg %p1724_p4 }
 0x37d   : > { %p1731_p9 = por %p1730_p5, %p1729_p6 }
 0x37f   : > { %p1732_p12 = pnand %p1731_p9, %p1725_p10 }
 0x381   : > { %1735 = shalt.err (!%p1732_p12)
}
 0x382   : > { %1431 = dma.vmem_to_hbm [thread:$0]  (%p2382_p7), %s1062_s26, 128, %s2231_s15, %s2239_s8  }
 0x383   : > { %s2383_s27 = sld [smem:[#allocation27_spill]]  ;;  %s1736_s13 = scalar_lea.vmem %s1075_s20, 128 }
 0x384   : > { %p1737_p3 = scmp.ne.s32.totalorder %s1075_s20, %s1736_s13  ;;  %s1857_s11 = smov [#allocation14]  }
 0x385   : > { %s1740_s17 = sshll.u32 %s1857_s11, 4  ;;  %s1741_s17 = int_to_ptr.vmem [resolvable:$false] %s1740_s17 }
 0x386   : > { %p1738_p13 = pnand %p1737_p3, %p2382_p7  ;;  %s1742_s18 = scalar_lea.vmem %s1741_s17, 256 }
 0x387   : > { %p1743_p2 = scmp.lt.s32.totalorder %s1075_s20, %s1741_s17  ;;  %p1744_p8 = scmp.lt.s32.totalorder %s1742_s18, %s1736_s13 }
 0x388   : > { %p1739_p0 = pneg %p1738_p13 }
 0x389   : > { %s1072_s29 = scalar_lea.hbm %s2383_s27, %s2225_s19  ;;  %p1745_p4 = por %p1744_p8, %p1743_p2 }
 0x38b   : > { %p1746_p10 = pnand %p1745_p4, %p1739_p0 }
 0x38d   : > { %1749 = shalt.err (!%p1746_p10)
}
 0x38e   : > { %s1750_s15 = scalar_lea.hbm %s1072_s29, 128  ;;  %s1754_s2 = scalar_lea.hbm %s2383_s27, 256 }
 0x38f   : > { %p1751_p11 = scmp.ne.s32.totalorder %s1072_s29, %s1750_s15  ;;  %p1755_p5 = scmp.lt.u32.totalorder %s1072_s29, %s2383_s27 }
 0x390   : > { %p1756_p9 = scmp.lt.u32.totalorder %s1754_s2, %s1750_s15  ;;  %p1758_p3 = scmp.lt.u32.totalorder %s1750_s15, %s1072_s29 }
 0x391   : > { %p1752_p1 = pnand %p1751_p11, %p2382_p7 }
 0x392   : > { %p1757_p12 = por %p1756_p9, %p1755_p5 }
 0x393   : > { %p1753_p6 = pneg %p1752_p1 }
 0x394   : > { %p1759_p13 = por %p1758_p3, %p1757_p12 }
 0x396   : > { %p1760_p0 = pnand %p1759_p13, %p1753_p6 }
 0x398   : > { %1763 = shalt.err (!%p1760_p0)
}
 0x399   : > { %1432 = dma.vmem_to_hbm [thread:$0]  (%p2382_p7), %s1075_s20, 128, %s1072_s29, %s2239_s8  }
 0x39a   : > { %s2384_s17 = sld [smem:[#allocation24_spill]]  ;;  %s503_s3 = scalar_lea.vmem [#allocation11], %s2206_s10 }
 0x39b   : > { %s1048_s18 = sshll.u32 %s503_s3, 4  ;;  %s2385_s0 = sld [smem:[#allocation25_spill]]  ;;  %s2287_s18 = int_to_ptr.vmem [resolvable:$true] %s1048_s18 }
 0x39c   : > { %s1025_s20 = scalar_lea.sflag [#allocation4], %s2151_s1  ;;  %s1764_s8 = scalar_lea.vmem %s2287_s18, 128 }
 0x39d   : > { %p1765_p2 = scmp.ne.s32.totalorder %s2287_s18, %s1764_s8  ;;  %s1858_s10 = smov [#allocation11]  }
 0x39e   : > { %s1768_s29 = sshll.u32 %s1858_s10, 4  ;;  %s1769_s29 = int_to_ptr.vmem [resolvable:$false] %s1768_s29 }
 0x39f   : > { %p1766_p8 = pnand %p1765_p2, %p2382_p7  ;;  %s1770_s28 = scalar_lea.vmem %s1769_s29, 256 }
 0x3a0   : > { %v1308_v0 = vld [vmem:[%s2384_s17] ss:$0 sm:$0xff]  ;;  %p1771_p10 = scmp.lt.s32.totalorder %s2287_s18, %s1769_s29  ;;  %p1772_p11 = scmp.lt.s32.totalorder %s1770_s28, %s1764_s8 }
 0x3a1   : > { %s2285_s2 = scalar_lea.hbm %s2385_s0, %s2225_s19  ;;  %p1767_p4 = pneg %p1766_p8 }
 0x3a2   : > { %p1773_p1 = por %p1772_p11, %p1771_p10 }
 0x3a4   : > { %p1774_p6 = pnand %p1773_p1, %p1767_p4 }
 0x448   : > { %v1015_v18 = vpop.f32.mrb[4].mxu1 }
 0x449   : > { %v1016_v19 = vadd.f32 %v1308_v0, %v1015_v18  ;;  %v1410_v20 = vpop.f32.mrb[5].mxu1 }
 0x44a   : > { %v1018_v21 = vpop.f32.mrb[6].mxu1 }
 0x44b   : > { %1021 = vst [vmem:[%s503_s3] sm:$0xff] %v1016_v19  ;;  %v1411_v22 = vpop.f32.mrb[7].mxu1 }
 0x44c   : > { %1777 = shalt.err (!%p1774_p6)
}
 0x44d   : > { %s1778_s1 = scalar_lea.hbm %s2285_s2, 128  ;;  %s1782_s11 = scalar_lea.hbm %s2385_s0, 256 }
 0x44e   : > { %p1779_p5 = scmp.ne.s32.totalorder %s2285_s2, %s1778_s1  ;;  %p1783_p3 = scmp.lt.u32.totalorder %s2285_s2, %s2385_s0 }
 0x44f   : > { %p1784_p13 = scmp.lt.u32.totalorder %s1782_s11, %s1778_s1  ;;  %p1786_p2 = scmp.lt.u32.totalorder %s1778_s1, %s2285_s2 }
 0x450   : > { %p1780_p9 = pnand %p1779_p5, %p2382_p7 }
 0x451   : > { %p1785_p0 = por %p1784_p13, %p1783_p3 }
 0x452   : > { %p1781_p12 = pneg %p1780_p9 }
 0x453   : > { %p1787_p8 = por %p1786_p2, %p1785_p0 }
 0x455   : > { %p1788_p4 = pnand %p1787_p8, %p1781_p12 }
 0x457   : > { %1791 = shalt.err (!%p1788_p4)
}
 0x458   : > { %1430 = dma.vmem_to_hbm [thread:$0]  (%p2382_p7), %s2287_s18, 128, %s2285_s2, %s1025_s20  }
 0x459 PF: > { %s1086_s15 = sand.u32 1, %s1830_s21   ;;  %p2386_p10 = scmp.ne.s32.totalorder %s2372_s16, 0 }
 0x45a   : > { %p2387_p11 = scmp.ge.s32.totalorder %s1842_s24, 2  ;;  %s1087_s26 = scalar_lea.sflag [#allocation4], %s1086_s15 }
 0x45c   : > { %p1454_p1 = pnand %p2387_p11, %p2386_p10 }
 0x45e   : > { %1821 = dma.done.wait (!%p1454_p1), %s1087_s26, 128  }
 0x45f   : > { %1823 = vsyncadd (!%p1454_p1), %s1087_s26, 4294967168  ;;  %s2388_s8 = sadd.s32 4294967294, %s1842_s24  }
 0x460   : > { %s1095_s10 = sand.u32 1, %s2388_s8  }
 0x461   : > { %s1096_s29 = scalar_lea.sflag [#allocation13], %s1095_s10 }
 0x462   : > { %1825 = dma.done.wait (!%p1454_p1), %s1096_s29, 256  }
 0x463   : > { %1827 = vsyncadd (!%p1454_p1), %s1096_s29, 4294967040  ;;  %p31_p7 = scmp.ge.s32.totalorder %s2073_s25, 4   ;;  %s2389_s21 = smov %s1834_s22 }
 0x464   : > { %s2390_s22 = smov %s1838_s23  ;;  %s2391_s23 = smov %s2084_s12 }
 0x465   : > { %s2392_s24 = smov %s2073_s25  ;;  %33 = sbr.rel (!%p31_p7) target bundleno = 18 (0x12), region = 156 }
 0x46c   :  { %1110 = vsyncpa [#allocation3], 1 }
 0x46d   :  { %1112 = vsyncpa [#allocation3 + $0x1], 1 }
 0x46e   :  { %1113 = vsyncpa [#allocation6], 1 }
 0x46f   :  { %1114 = vsyncpa [#allocation9], 1 }
 0x470   :  { %1115 = vsyncpa [#allocation4], 1 }
 0x471   :  { %1117 = vsyncpa [#allocation4 + $0x1], 1 }
 0x472   :  { %1118 = vsyncpa [#allocation13], 1 }
 0x473   :  { %1120 = vsyncpa [#allocation13 + $0x1], 1 }

</bundles_post_ra>
